<compile_context>
chip_gen: v7x
topology: tpu7x:2x2x1
jax: 0.10.0
libtpu: 0.0.40
codegen_flags: <defaults>
</compile_context>

<pallas_src>
import jax
import jax.numpy as jnp
from jax.experimental import pallas as pl
from jax.experimental.pallas import tpu as pltpu


def _make_kernel(c_in, c_out, h, w):
    """Build the fused depthwise(3x3) + ReLU + pointwise(1x1) kernel."""

    def kernel(x_ref, wdw_ref, bdw_ref, wpw_ref, bpw_ref, o_ref, xp_ref):
        # x_ref  : (1, C_in, H, W)     VMEM block (one image)
        # wdw_ref: (C_in, 9)           SMEM depthwise 3x3 taps (row-major)
        # bdw_ref: (C_in,)             SMEM depthwise bias
        # wpw_ref: (C_out, C_in)       SMEM pointwise weight
        # bpw_ref: (C_out,)            SMEM pointwise bias
        # o_ref  : (1, C_out, H, W)    VMEM output block
        # xp_ref : (C_in, H+2, W+2)    VMEM scratch (zero-halo staging buffer)

        # Stage the image with a 1-pixel zero halo: one full zero fill plus a
        # single vectorized interior store covering all channels.
        xp_ref[...] = jnp.zeros((c_in, h + 2, w + 2), dtype=jnp.float32)
        xp_ref[:, 1:h + 1, 1:w + 1] = x_ref[0]

        # Depthwise 3x3 conv + bias + ReLU, one channel at a time.
        # Pure VPU scalar-broadcast FMAs (weights are scalars in SMEM).
        dw = []
        for c in range(c_in):
            acc = jnp.zeros((h, w), dtype=jnp.float32)
            for di in range(3):
                for dj in range(3):
                    acc = acc + wdw_ref[c, di * 3 + dj] * xp_ref[c, di:di + h, dj:dj + w]
            dw.append(jnp.maximum(acc + bdw_ref[c], 0.0))

        # Pointwise 1x1 conv (channel mixing) + bias. No trailing ReLU
        # (matches the PyTorch module: Conv -> ReLU -> Conv).
        for o in range(c_out):
            y = jnp.zeros((h, w), dtype=jnp.float32)
            for c in range(c_in):
                y = y + wpw_ref[o, c] * dw[c]
            o_ref[0, o] = y + bpw_ref[o]

    return kernel


def depthwise_separable_conv(x, w_dw, b_dw, w_pw, b_pw):
    """Pallas implementation of DepthwiseSeparableConv.forward.

    Args:
      x:    (N, C_in, H, W) float32 (NCHW, like the PyTorch module).
      w_dw: depthwise conv weight, PyTorch layout (C_in, 1, 3, 3) (or (C_in,3,3)).
      b_dw: (C_in,) depthwise conv bias.
      w_pw: pointwise conv weight, PyTorch layout (C_out, C_in, 1, 1) (or (C_out,C_in)).
      b_pw: (C_out,) pointwise conv bias.
    Returns:
      (N, C_out, H, W) float32.
    """
    x = jnp.asarray(x, jnp.float32)
    n, c_in, h, w = x.shape

    w_dw = jnp.asarray(w_dw, jnp.float32).reshape(c_in, 9)          # 3x3 taps, row-major
    b_dw = jnp.asarray(b_dw, jnp.float32).reshape(c_in)
    w_pw = jnp.asarray(w_pw, jnp.float32)
    c_out = w_pw.shape[0]
    w_pw = w_pw.reshape(c_out, c_in)
    b_pw = jnp.asarray(b_pw, jnp.float32).reshape(c_out)

    kernel = _make_kernel(c_in, c_out, h, w)

    flops = 2 * n * h * w * c_in * (9 + c_out)
    bytes_accessed = 4 * (n * c_in * h * w + n * c_out * h * w
                          + w_dw.size + b_dw.size + w_pw.size + b_pw.size)
    cost = pl.CostEstimate(flops=flops, transcendentals=0,
                           bytes_accessed=bytes_accessed)

    out = pl.pallas_call(
        kernel,
        out_shape=jax.ShapeDtypeStruct((n, c_out, h, w), jnp.float32),
        grid_spec=pltpu.PrefetchScalarGridSpec(
            num_scalar_prefetch=0,
            grid=(n,),
            in_specs=[
                pl.BlockSpec((1, c_in, h, w), lambda i: (i, 0, 0, 0)),        # x (one image)
                pl.BlockSpec(memory_space=pltpu.MemorySpace.SMEM),            # depthwise weights
                pl.BlockSpec(memory_space=pltpu.MemorySpace.SMEM),            # depthwise bias
                pl.BlockSpec(memory_space=pltpu.MemorySpace.SMEM),            # pointwise weights
                pl.BlockSpec(memory_space=pltpu.MemorySpace.SMEM),            # pointwise bias
            ],
            out_specs=pl.BlockSpec((1, c_out, h, w), lambda i: (i, 0, 0, 0)),
            scratch_shapes=[pltpu.VMEM((c_in, h + 2, w + 2), jnp.float32)],
        ),
        compiler_params=pltpu.CompilerParams(
            dimension_semantics=("parallel",),
        ),
        cost_estimate=cost,
    )(x, w_dw, b_dw, w_pw, b_pw)
    return out


def _reference(x, w_dw, b_dw, w_pw, b_pw):
    """Pure-JAX reference mirroring the PyTorch forward (squeezed weight shapes)."""
    n, c_in, h, w = x.shape
    xp = jnp.pad(x, ((0, 0), (0, 0), (1, 1), (1, 1)))
    acc = jnp.zeros_like(x)
    for di in range(3):
        for dj in range(3):
            acc = acc + w_dw[None, :, di, dj, None, None] * xp[:, :, di:di + h, dj:dj + w]
    acc = acc + b_dw[None, :, None, None]
    acc = jnp.maximum(acc, 0.0)                                   # ReLU between the convs
    out = jnp.einsum("nchw,oc->nohw", acc, w_pw) + b_pw[None, :, None, None]
    return out


if __name__ == "__main__":
    key = jax.random.PRNGKey(0)
    k_x, k_wdw, k_bdw, k_wpw, k_bpw = jax.random.split(key, 5)

    N, C_IN, C_OUT, H, W = 2, 4, 8, 16, 16

    x = jax.random.normal(k_x, (N, C_IN, H, W), jnp.float32)

    # PyTorch parameter shapes: depthwise.weight (C_in,1,3,3), pointwise.weight (C_out,C_in,1,1)
    w_dw = jax.random.normal(k_wdw, (C_IN, 1, 3, 3), jnp.float32) * 0.5
    b_dw = jax.random.normal(k_bdw, (C_IN,), jnp.float32) * 0.1
    w_pw = jax.random.normal(k_wpw, (C_OUT, C_IN, 1, 1), jnp.float32) * 0.5
    b_pw = jax.random.normal(k_bpw, (C_OUT,), jnp.float32) * 0.1

    out = depthwise_separable_conv(x, w_dw, b_dw, w_pw, b_pw)
    out = jax.block_until_ready(out)

    ref = _reference(x, w_dw.reshape(C_IN, 3, 3), b_dw, w_pw.reshape(C_OUT, C_IN), b_pw)
    assert out.shape == (N, C_OUT, H, W)
    assert jnp.allclose(out, ref, atol=1e-4, rtol=1e-4), "mismatch vs reference"

    print("KERNEL_OK")
</pallas_src>

<mosaic_0001>
module attributes {stable_mosaic.version = 11 : i64} {
  func.func @kernel(%arg0: i32, %arg1: memref<1x4x16x16xf32, #tpu.memory_space<vmem>>, %arg2: memref<4x9xf32, #tpu.memory_space<smem>>, %arg3: memref<4xf32, #tpu.memory_space<smem>>, %arg4: memref<8x4xf32, #tpu.memory_space<smem>>, %arg5: memref<8xf32, #tpu.memory_space<smem>>, %arg6: memref<1x8x16x16xf32, #tpu.memory_space<vmem>>, %arg7: memref<4x18x18xf32, #tpu.memory_space<vmem>>) attributes {dimension_semantics = [#tpu.dimension_semantics<parallel>], iteration_bounds = array<i64: 2>, scalar_prefetch = 0 : i64, scratch_operands = 1 : i64, tpu.core_type = #tpu.core_type<tc>, window_params = [{transform_indices = @transform_0, window_bounds = array<i64: 1, 4, 16, 16>}, {transform_indices = @transform_1, window_bounds = array<i64: 4, 9>}, {transform_indices = @transform_2, window_bounds = array<i64: 4>}, {transform_indices = @transform_3, window_bounds = array<i64: 8, 4>}, {transform_indices = @transform_4, window_bounds = array<i64: 8>}, {transform_indices = @transform_5, window_bounds = array<i64: 1, 8, 16, 16>}]} {
    %cst = arith.constant 0.000000e+00 : f32
    %0 = vector.broadcast %cst : f32 to vector<4x18x18xf32>
    %c0 = arith.constant 0 : index
    %c0_0 = arith.constant 0 : index
    %c0_1 = arith.constant 0 : index
    %1 = vector.load %arg7[%c0, %c0_0, %c0_1] : memref<4x18x18xf32, #tpu.memory_space<vmem>>, vector<4x18x18xf32>
    tpu.vector_store %arg7[%c0, %c0_0, %c0_1], %0 {strides = array<i32>} : memref<4x18x18xf32, #tpu.memory_space<vmem>>, vector<4x18x18xf32>,
    %c0_2 = arith.constant 0 : index
    %c0_3 = arith.constant 0 : index
    %c0_4 = arith.constant 0 : index
    %c0_5 = arith.constant 0 : index
    %2 = vector.load %arg1[%c0_2, %c0_3, %c0_4, %c0_5] : memref<1x4x16x16xf32, #tpu.memory_space<vmem>>, vector<1x4x16x16xf32>
    %3 = vector.shape_cast %2 : vector<1x4x16x16xf32> to vector<4x16x16xf32>
    %c0_6 = arith.constant 0 : index
    %c1 = arith.constant 1 : index
    %c1_7 = arith.constant 1 : index
    %4 = vector.load %arg7[%c0_6, %c1, %c1_7] : memref<4x18x18xf32, #tpu.memory_space<vmem>>, vector<4x16x16xf32>
    tpu.vector_store %arg7[%c0_6, %c1, %c1_7], %3 {strides = array<i32>} : memref<4x18x18xf32, #tpu.memory_space<vmem>>, vector<4x16x16xf32>,
    %cst_8 = arith.constant 0.000000e+00 : f32
    %5 = vector.broadcast %cst_8 : f32 to vector<16x16xf32>
    %c0_9 = arith.constant 0 : index
    %c0_10 = arith.constant 0 : index
    %6 = memref.load %arg2[%c0_9, %c0_10] : memref<4x9xf32, #tpu.memory_space<smem>>
    %c0_11 = arith.constant 0 : index
    %c0_12 = arith.constant 0 : index
    %c0_13 = arith.constant 0 : index
    %7 = vector.load %arg7[%c0_11, %c0_12, %c0_13] : memref<4x18x18xf32, #tpu.memory_space<vmem>>, vector<1x16x16xf32>
    %8 = vector.shape_cast %7 : vector<1x16x16xf32> to vector<16x16xf32>
    %9 = vector.broadcast %6 : f32 to vector<16x16xf32>
    %10 = arith.mulf %9, %8 : vector<16x16xf32>
    %11 = arith.addf %5, %10 : vector<16x16xf32>
    %c0_14 = arith.constant 0 : index
    %c1_15 = arith.constant 1 : index
    %12 = memref.load %arg2[%c0_14, %c1_15] : memref<4x9xf32, #tpu.memory_space<smem>>
    %c0_16 = arith.constant 0 : index
    %c0_17 = arith.constant 0 : index
    %c1_18 = arith.constant 1 : index
    %13 = vector.load %arg7[%c0_16, %c0_17, %c1_18] : memref<4x18x18xf32, #tpu.memory_space<vmem>>, vector<1x16x16xf32>
    %14 = vector.shape_cast %13 : vector<1x16x16xf32> to vector<16x16xf32>
    %15 = vector.broadcast %12 : f32 to vector<16x16xf32>
    %16 = arith.mulf %15, %14 : vector<16x16xf32>
    %17 = arith.addf %11, %16 : vector<16x16xf32>
    %c0_19 = arith.constant 0 : index
    %c2 = arith.constant 2 : index
    %18 = memref.load %arg2[%c0_19, %c2] : memref<4x9xf32, #tpu.memory_space<smem>>
    %c0_20 = arith.constant 0 : index
    %c0_21 = arith.constant 0 : index
    %c2_22 = arith.constant 2 : index
    %19 = vector.load %arg7[%c0_20, %c0_21, %c2_22] : memref<4x18x18xf32, #tpu.memory_space<vmem>>, vector<1x16x16xf32>
    %20 = vector.shape_cast %19 : vector<1x16x16xf32> to vector<16x16xf32>
    %21 = vector.broadcast %18 : f32 to vector<16x16xf32>
    %22 = arith.mulf %21, %20 : vector<16x16xf32>
    %23 = arith.addf %17, %22 : vector<16x16xf32>
    %c0_23 = arith.constant 0 : index
    %c3 = arith.constant 3 : index
    %24 = memref.load %arg2[%c0_23, %c3] : memref<4x9xf32, #tpu.memory_space<smem>>
    %c0_24 = arith.constant 0 : index
    %c1_25 = arith.constant 1 : index
    %c0_26 = arith.constant 0 : index
    %25 = vector.load %arg7[%c0_24, %c1_25, %c0_26] : memref<4x18x18xf32, #tpu.memory_space<vmem>>, vector<1x16x16xf32>
    %26 = vector.shape_cast %25 : vector<1x16x16xf32> to vector<16x16xf32>
    %27 = vector.broadcast %24 : f32 to vector<16x16xf32>
    %28 = arith.mulf %27, %26 : vector<16x16xf32>
    %29 = arith.addf %23, %28 : vector<16x16xf32>
    %c0_27 = arith.constant 0 : index
    %c4 = arith.constant 4 : index
    %30 = memref.load %arg2[%c0_27, %c4] : memref<4x9xf32, #tpu.memory_space<smem>>
    %c0_28 = arith.constant 0 : index
    %c1_29 = arith.constant 1 : index
    %c1_30 = arith.constant 1 : index
    %31 = vector.load %arg7[%c0_28, %c1_29, %c1_30] : memref<4x18x18xf32, #tpu.memory_space<vmem>>, vector<1x16x16xf32>
    %32 = vector.shape_cast %31 : vector<1x16x16xf32> to vector<16x16xf32>
    %33 = vector.broadcast %30 : f32 to vector<16x16xf32>
    %34 = arith.mulf %33, %32 : vector<16x16xf32>
    %35 = arith.addf %29, %34 : vector<16x16xf32>
    %c0_31 = arith.constant 0 : index
    %c5 = arith.constant 5 : index
    %36 = memref.load %arg2[%c0_31, %c5] : memref<4x9xf32, #tpu.memory_space<smem>>
    %c0_32 = arith.constant 0 : index
    %c1_33 = arith.constant 1 : index
    %c2_34 = arith.constant 2 : index
    %37 = vector.load %arg7[%c0_32, %c1_33, %c2_34] : memref<4x18x18xf32, #tpu.memory_space<vmem>>, vector<1x16x16xf32>
    %38 = vector.shape_cast %37 : vector<1x16x16xf32> to vector<16x16xf32>
    %39 = vector.broadcast %36 : f32 to vector<16x16xf32>
    %40 = arith.mulf %39, %38 : vector<16x16xf32>
    %41 = arith.addf %35, %40 : vector<16x16xf32>
    %c0_35 = arith.constant 0 : index
    %c6 = arith.constant 6 : index
    %42 = memref.load %arg2[%c0_35, %c6] : memref<4x9xf32, #tpu.memory_space<smem>>
    %c0_36 = arith.constant 0 : index
    %c2_37 = arith.constant 2 : index
    %c0_38 = arith.constant 0 : index
    %43 = vector.load %arg7[%c0_36, %c2_37, %c0_38] : memref<4x18x18xf32, #tpu.memory_space<vmem>>, vector<1x16x16xf32>
    %44 = vector.shape_cast %43 : vector<1x16x16xf32> to vector<16x16xf32>
    %45 = vector.broadcast %42 : f32 to vector<16x16xf32>
    %46 = arith.mulf %45, %44 : vector<16x16xf32>
    %47 = arith.addf %41, %46 : vector<16x16xf32>
    %c0_39 = arith.constant 0 : index
    %c7 = arith.constant 7 : index
    %48 = memref.load %arg2[%c0_39, %c7] : memref<4x9xf32, #tpu.memory_space<smem>>
    %c0_40 = arith.constant 0 : index
    %c2_41 = arith.constant 2 : index
    %c1_42 = arith.constant 1 : index
    %49 = vector.load %arg7[%c0_40, %c2_41, %c1_42] : memref<4x18x18xf32, #tpu.memory_space<vmem>>, vector<1x16x16xf32>
    %50 = vector.shape_cast %49 : vector<1x16x16xf32> to vector<16x16xf32>
    %51 = vector.broadcast %48 : f32 to vector<16x16xf32>
    %52 = arith.mulf %51, %50 : vector<16x16xf32>
    %53 = arith.addf %47, %52 : vector<16x16xf32>
    %c0_43 = arith.constant 0 : index
    %c8 = arith.constant 8 : index
    %54 = memref.load %arg2[%c0_43, %c8] : memref<4x9xf32, #tpu.memory_space<smem>>
    %c0_44 = arith.constant 0 : index
    %c2_45 = arith.constant 2 : index
    %c2_46 = arith.constant 2 : index
    %55 = vector.load %arg7[%c0_44, %c2_45, %c2_46] : memref<4x18x18xf32, #tpu.memory_space<vmem>>, vector<1x16x16xf32>
    %56 = vector.shape_cast %55 : vector<1x16x16xf32> to vector<16x16xf32>
    %57 = vector.broadcast %54 : f32 to vector<16x16xf32>
    %58 = arith.mulf %57, %56 : vector<16x16xf32>
    %59 = arith.addf %53, %58 : vector<16x16xf32>
    %c0_47 = arith.constant 0 : index
    %60 = memref.load %arg3[%c0_47] : memref<4xf32, #tpu.memory_space<smem>>
    %61 = vector.broadcast %60 : f32 to vector<16x16xf32>
    %62 = arith.addf %59, %61 : vector<16x16xf32>
    %cst_48 = arith.constant 0.000000e+00 : f32
    %63 = vector.broadcast %cst_48 : f32 to vector<16x16xf32>
    %64 = arith.maximumf %62, %63 : vector<16x16xf32>
    %cst_49 = arith.constant 0.000000e+00 : f32
    %65 = vector.broadcast %cst_49 : f32 to vector<16x16xf32>
    %c1_50 = arith.constant 1 : index
    %c0_51 = arith.constant 0 : index
    %66 = memref.load %arg2[%c1_50, %c0_51] : memref<4x9xf32, #tpu.memory_space<smem>>
    %c1_52 = arith.constant 1 : index
    %c0_53 = arith.constant 0 : index
    %c0_54 = arith.constant 0 : index
    %67 = vector.load %arg7[%c1_52, %c0_53, %c0_54] : memref<4x18x18xf32, #tpu.memory_space<vmem>>, vector<1x16x16xf32>
    %68 = vector.shape_cast %67 : vector<1x16x16xf32> to vector<16x16xf32>
    %69 = vector.broadcast %66 : f32 to vector<16x16xf32>
    %70 = arith.mulf %69, %68 : vector<16x16xf32>
    %71 = arith.addf %65, %70 : vector<16x16xf32>
    %c1_55 = arith.constant 1 : index
    %c1_56 = arith.constant 1 : index
    %72 = memref.load %arg2[%c1_55, %c1_56] : memref<4x9xf32, #tpu.memory_space<smem>>
    %c1_57 = arith.constant 1 : index
    %c0_58 = arith.constant 0 : index
    %c1_59 = arith.constant 1 : index
    %73 = vector.load %arg7[%c1_57, %c0_58, %c1_59] : memref<4x18x18xf32, #tpu.memory_space<vmem>>, vector<1x16x16xf32>
    %74 = vector.shape_cast %73 : vector<1x16x16xf32> to vector<16x16xf32>
    %75 = vector.broadcast %72 : f32 to vector<16x16xf32>
    %76 = arith.mulf %75, %74 : vector<16x16xf32>
    %77 = arith.addf %71, %76 : vector<16x16xf32>
    %c1_60 = arith.constant 1 : index
    %c2_61 = arith.constant 2 : index
    %78 = memref.load %arg2[%c1_60, %c2_61] : memref<4x9xf32, #tpu.memory_space<smem>>
    %c1_62 = arith.constant 1 : index
    %c0_63 = arith.constant 0 : index
    %c2_64 = arith.constant 2 : index
    %79 = vector.load %arg7[%c1_62, %c0_63, %c2_64] : memref<4x18x18xf32, #tpu.memory_space<vmem>>, vector<1x16x16xf32>
    %80 = vector.shape_cast %79 : vector<1x16x16xf32> to vector<16x16xf32>
    %81 = vector.broadcast %78 : f32 to vector<16x16xf32>
    %82 = arith.mulf %81, %80 : vector<16x16xf32>
    %83 = arith.addf %77, %82 : vector<16x16xf32>
    %c1_65 = arith.constant 1 : index
    %c3_66 = arith.constant 3 : index
    %84 = memref.load %arg2[%c1_65, %c3_66] : memref<4x9xf32, #tpu.memory_space<smem>>
    %c1_67 = arith.constant 1 : index
    %c1_68 = arith.constant 1 : index
    %c0_69 = arith.constant 0 : index
    %85 = vector.load %arg7[%c1_67, %c1_68, %c0_69] : memref<4x18x18xf32, #tpu.memory_space<vmem>>, vector<1x16x16xf32>
    %86 = vector.shape_cast %85 : vector<1x16x16xf32> to vector<16x16xf32>
    %87 = vector.broadcast %84 : f32 to vector<16x16xf32>
    %88 = arith.mulf %87, %86 : vector<16x16xf32>
    %89 = arith.addf %83, %88 : vector<16x16xf32>
    %c1_70 = arith.constant 1 : index
    %c4_71 = arith.constant 4 : index
    %90 = memref.load %arg2[%c1_70, %c4_71] : memref<4x9xf32, #tpu.memory_space<smem>>
    %c1_72 = arith.constant 1 : index
    %c1_73 = arith.constant 1 : index
    %c1_74 = arith.constant 1 : index
    %91 = vector.load %arg7[%c1_72, %c1_73, %c1_74] : memref<4x18x18xf32, #tpu.memory_space<vmem>>, vector<1x16x16xf32>
    %92 = vector.shape_cast %91 : vector<1x16x16xf32> to vector<16x16xf32>
    %93 = vector.broadcast %90 : f32 to vector<16x16xf32>
    %94 = arith.mulf %93, %92 : vector<16x16xf32>
    %95 = arith.addf %89, %94 : vector<16x16xf32>
    %c1_75 = arith.constant 1 : index
    %c5_76 = arith.constant 5 : index
    %96 = memref.load %arg2[%c1_75, %c5_76] : memref<4x9xf32, #tpu.memory_space<smem>>
    %c1_77 = arith.constant 1 : index
    %c1_78 = arith.constant 1 : index
    %c2_79 = arith.constant 2 : index
    %97 = vector.load %arg7[%c1_77, %c1_78, %c2_79] : memref<4x18x18xf32, #tpu.memory_space<vmem>>, vector<1x16x16xf32>
    %98 = vector.shape_cast %97 : vector<1x16x16xf32> to vector<16x16xf32>
    %99 = vector.broadcast %96 : f32 to vector<16x16xf32>
    %100 = arith.mulf %99, %98 : vector<16x16xf32>
    %101 = arith.addf %95, %100 : vector<16x16xf32>
    %c1_80 = arith.constant 1 : index
    %c6_81 = arith.constant 6 : index
    %102 = memref.load %arg2[%c1_80, %c6_81] : memref<4x9xf32, #tpu.memory_space<smem>>
    %c1_82 = arith.constant 1 : index
    %c2_83 = arith.constant 2 : index
    %c0_84 = arith.constant 0 : index
    %103 = vector.load %arg7[%c1_82, %c2_83, %c0_84] : memref<4x18x18xf32, #tpu.memory_space<vmem>>, vector<1x16x16xf32>
    %104 = vector.shape_cast %103 : vector<1x16x16xf32> to vector<16x16xf32>
    %105 = vector.broadcast %102 : f32 to vector<16x16xf32>
    %106 = arith.mulf %105, %104 : vector<16x16xf32>
    %107 = arith.addf %101, %106 : vector<16x16xf32>
    %c1_85 = arith.constant 1 : index
    %c7_86 = arith.constant 7 : index
    %108 = memref.load %arg2[%c1_85, %c7_86] : memref<4x9xf32, #tpu.memory_space<smem>>
    %c1_87 = arith.constant 1 : index
    %c2_88 = arith.constant 2 : index
    %c1_89 = arith.constant 1 : index
    %109 = vector.load %arg7[%c1_87, %c2_88, %c1_89] : memref<4x18x18xf32, #tpu.memory_space<vmem>>, vector<1x16x16xf32>
    %110 = vector.shape_cast %109 : vector<1x16x16xf32> to vector<16x16xf32>
    %111 = vector.broadcast %108 : f32 to vector<16x16xf32>
    %112 = arith.mulf %111, %110 : vector<16x16xf32>
    %113 = arith.addf %107, %112 : vector<16x16xf32>
    %c1_90 = arith.constant 1 : index
    %c8_91 = arith.constant 8 : index
    %114 = memref.load %arg2[%c1_90, %c8_91] : memref<4x9xf32, #tpu.memory_space<smem>>
    %c1_92 = arith.constant 1 : index
    %c2_93 = arith.constant 2 : index
    %c2_94 = arith.constant 2 : index
    %115 = vector.load %arg7[%c1_92, %c2_93, %c2_94] : memref<4x18x18xf32, #tpu.memory_space<vmem>>, vector<1x16x16xf32>
    %116 = vector.shape_cast %115 : vector<1x16x16xf32> to vector<16x16xf32>
    %117 = vector.broadcast %114 : f32 to vector<16x16xf32>
    %118 = arith.mulf %117, %116 : vector<16x16xf32>
    %119 = arith.addf %113, %118 : vector<16x16xf32>
    %c1_95 = arith.constant 1 : index
    %120 = memref.load %arg3[%c1_95] : memref<4xf32, #tpu.memory_space<smem>>
    %121 = vector.broadcast %120 : f32 to vector<16x16xf32>
    %122 = arith.addf %119, %121 : vector<16x16xf32>
    %cst_96 = arith.constant 0.000000e+00 : f32
    %123 = vector.broadcast %cst_96 : f32 to vector<16x16xf32>
    %124 = arith.maximumf %122, %123 : vector<16x16xf32>
    %cst_97 = arith.constant 0.000000e+00 : f32
    %125 = vector.broadcast %cst_97 : f32 to vector<16x16xf32>
    %c2_98 = arith.constant 2 : index
    %c0_99 = arith.constant 0 : index
    %126 = memref.load %arg2[%c2_98, %c0_99] : memref<4x9xf32, #tpu.memory_space<smem>>
    %c2_100 = arith.constant 2 : index
    %c0_101 = arith.constant 0 : index
    %c0_102 = arith.constant 0 : index
    %127 = vector.load %arg7[%c2_100, %c0_101, %c0_102] : memref<4x18x18xf32, #tpu.memory_space<vmem>>, vector<1x16x16xf32>
    %128 = vector.shape_cast %127 : vector<1x16x16xf32> to vector<16x16xf32>
    %129 = vector.broadcast %126 : f32 to vector<16x16xf32>
    %130 = arith.mulf %129, %128 : vector<16x16xf32>
    %131 = arith.addf %125, %130 : vector<16x16xf32>
    %c2_103 = arith.constant 2 : index
    %c1_104 = arith.constant 1 : index
    %132 = memref.load %arg2[%c2_103, %c1_104] : memref<4x9xf32, #tpu.memory_space<smem>>
    %c2_105 = arith.constant 2 : index
    %c0_106 = arith.constant 0 : index
    %c1_107 = arith.constant 1 : index
    %133 = vector.load %arg7[%c2_105, %c0_106, %c1_107] : memref<4x18x18xf32, #tpu.memory_space<vmem>>, vector<1x16x16xf32>
    %134 = vector.shape_cast %133 : vector<1x16x16xf32> to vector<16x16xf32>
    %135 = vector.broadcast %132 : f32 to vector<16x16xf32>
    %136 = arith.mulf %135, %134 : vector<16x16xf32>
    %137 = arith.addf %131, %136 : vector<16x16xf32>
    %c2_108 = arith.constant 2 : index
    %c2_109 = arith.constant 2 : index
    %138 = memref.load %arg2[%c2_108, %c2_109] : memref<4x9xf32, #tpu.memory_space<smem>>
    %c2_110 = arith.constant 2 : index
    %c0_111 = arith.constant 0 : index
    %c2_112 = arith.constant 2 : index
    %139 = vector.load %arg7[%c2_110, %c0_111, %c2_112] : memref<4x18x18xf32, #tpu.memory_space<vmem>>, vector<1x16x16xf32>
    %140 = vector.shape_cast %139 : vector<1x16x16xf32> to vector<16x16xf32>
    %141 = vector.broadcast %138 : f32 to vector<16x16xf32>
    %142 = arith.mulf %141, %140 : vector<16x16xf32>
    %143 = arith.addf %137, %142 : vector<16x16xf32>
    %c2_113 = arith.constant 2 : index
    %c3_114 = arith.constant 3 : index
    %144 = memref.load %arg2[%c2_113, %c3_114] : memref<4x9xf32, #tpu.memory_space<smem>>
    %c2_115 = arith.constant 2 : index
    %c1_116 = arith.constant 1 : index
    %c0_117 = arith.constant 0 : index
    %145 = vector.load %arg7[%c2_115, %c1_116, %c0_117] : memref<4x18x18xf32, #tpu.memory_space<vmem>>, vector<1x16x16xf32>
    %146 = vector.shape_cast %145 : vector<1x16x16xf32> to vector<16x16xf32>
    %147 = vector.broadcast %144 : f32 to vector<16x16xf32>
    %148 = arith.mulf %147, %146 : vector<16x16xf32>
    %149 = arith.addf %143, %148 : vector<16x16xf32>
    %c2_118 = arith.constant 2 : index
    %c4_119 = arith.constant 4 : index
    %150 = memref.load %arg2[%c2_118, %c4_119] : memref<4x9xf32, #tpu.memory_space<smem>>
    %c2_120 = arith.constant 2 : index
    %c1_121 = arith.constant 1 : index
    %c1_122 = arith.constant 1 : index
    %151 = vector.load %arg7[%c2_120, %c1_121, %c1_122] : memref<4x18x18xf32, #tpu.memory_space<vmem>>, vector<1x16x16xf32>
    %152 = vector.shape_cast %151 : vector<1x16x16xf32> to vector<16x16xf32>
    %153 = vector.broadcast %150 : f32 to vector<16x16xf32>
    %154 = arith.mulf %153, %152 : vector<16x16xf32>
    %155 = arith.addf %149, %154 : vector<16x16xf32>
    %c2_123 = arith.constant 2 : index
    %c5_124 = arith.constant 5 : index
    %156 = memref.load %arg2[%c2_123, %c5_124] : memref<4x9xf32, #tpu.memory_space<smem>>
    %c2_125 = arith.constant 2 : index
    %c1_126 = arith.constant 1 : index
    %c2_127 = arith.constant 2 : index
    %157 = vector.load %arg7[%c2_125, %c1_126, %c2_127] : memref<4x18x18xf32, #tpu.memory_space<vmem>>, vector<1x16x16xf32>
    %158 = vector.shape_cast %157 : vector<1x16x16xf32> to vector<16x16xf32>
    %159 = vector.broadcast %156 : f32 to vector<16x16xf32>
    %160 = arith.mulf %159, %158 : vector<16x16xf32>
    %161 = arith.addf %155, %160 : vector<16x16xf32>
    %c2_128 = arith.constant 2 : index
    %c6_129 = arith.constant 6 : index
    %162 = memref.load %arg2[%c2_128, %c6_129] : memref<4x9xf32, #tpu.memory_space<smem>>
    %c2_130 = arith.constant 2 : index
    %c2_131 = arith.constant 2 : index
    %c0_132 = arith.constant 0 : index
    %163 = vector.load %arg7[%c2_130, %c2_131, %c0_132] : memref<4x18x18xf32, #tpu.memory_space<vmem>>, vector<1x16x16xf32>
    %164 = vector.shape_cast %163 : vector<1x16x16xf32> to vector<16x16xf32>
    %165 = vector.broadcast %162 : f32 to vector<16x16xf32>
    %166 = arith.mulf %165, %164 : vector<16x16xf32>
    %167 = arith.addf %161, %166 : vector<16x16xf32>
    %c2_133 = arith.constant 2 : index
    %c7_134 = arith.constant 7 : index
    %168 = memref.load %arg2[%c2_133, %c7_134] : memref<4x9xf32, #tpu.memory_space<smem>>
    %c2_135 = arith.constant 2 : index
    %c2_136 = arith.constant 2 : index
    %c1_137 = arith.constant 1 : index
    %169 = vector.load %arg7[%c2_135, %c2_136, %c1_137] : memref<4x18x18xf32, #tpu.memory_space<vmem>>, vector<1x16x16xf32>
    %170 = vector.shape_cast %169 : vector<1x16x16xf32> to vector<16x16xf32>
    %171 = vector.broadcast %168 : f32 to vector<16x16xf32>
    %172 = arith.mulf %171, %170 : vector<16x16xf32>
    %173 = arith.addf %167, %172 : vector<16x16xf32>
    %c2_138 = arith.constant 2 : index
    %c8_139 = arith.constant 8 : index
    %174 = memref.load %arg2[%c2_138, %c8_139] : memref<4x9xf32, #tpu.memory_space<smem>>
    %c2_140 = arith.constant 2 : index
    %c2_141 = arith.constant 2 : index
    %c2_142 = arith.constant 2 : index
    %175 = vector.load %arg7[%c2_140, %c2_141, %c2_142] : memref<4x18x18xf32, #tpu.memory_space<vmem>>, vector<1x16x16xf32>
    %176 = vector.shape_cast %175 : vector<1x16x16xf32> to vector<16x16xf32>
    %177 = vector.broadcast %174 : f32 to vector<16x16xf32>
    %178 = arith.mulf %177, %176 : vector<16x16xf32>
    %179 = arith.addf %173, %178 : vector<16x16xf32>
    %c2_143 = arith.constant 2 : index
    %180 = memref.load %arg3[%c2_143] : memref<4xf32, #tpu.memory_space<smem>>
    %181 = vector.broadcast %180 : f32 to vector<16x16xf32>
    %182 = arith.addf %179, %181 : vector<16x16xf32>
    %cst_144 = arith.constant 0.000000e+00 : f32
    %183 = vector.broadcast %cst_144 : f32 to vector<16x16xf32>
    %184 = arith.maximumf %182, %183 : vector<16x16xf32>
    %cst_145 = arith.constant 0.000000e+00 : f32
    %185 = vector.broadcast %cst_145 : f32 to vector<16x16xf32>
    %c3_146 = arith.constant 3 : index
    %c0_147 = arith.constant 0 : index
    %186 = memref.load %arg2[%c3_146, %c0_147] : memref<4x9xf32, #tpu.memory_space<smem>>
    %c3_148 = arith.constant 3 : index
    %c0_149 = arith.constant 0 : index
    %c0_150 = arith.constant 0 : index
    %187 = vector.load %arg7[%c3_148, %c0_149, %c0_150] : memref<4x18x18xf32, #tpu.memory_space<vmem>>, vector<1x16x16xf32>
    %188 = vector.shape_cast %187 : vector<1x16x16xf32> to vector<16x16xf32>
    %189 = vector.broadcast %186 : f32 to vector<16x16xf32>
    %190 = arith.mulf %189, %188 : vector<16x16xf32>
    %191 = arith.addf %185, %190 : vector<16x16xf32>
    %c3_151 = arith.constant 3 : index
    %c1_152 = arith.constant 1 : index
    %192 = memref.load %arg2[%c3_151, %c1_152] : memref<4x9xf32, #tpu.memory_space<smem>>
    %c3_153 = arith.constant 3 : index
    %c0_154 = arith.constant 0 : index
    %c1_155 = arith.constant 1 : index
    %193 = vector.load %arg7[%c3_153, %c0_154, %c1_155] : memref<4x18x18xf32, #tpu.memory_space<vmem>>, vector<1x16x16xf32>
    %194 = vector.shape_cast %193 : vector<1x16x16xf32> to vector<16x16xf32>
    %195 = vector.broadcast %192 : f32 to vector<16x16xf32>
    %196 = arith.mulf %195, %194 : vector<16x16xf32>
    %197 = arith.addf %191, %196 : vector<16x16xf32>
    %c3_156 = arith.constant 3 : index
    %c2_157 = arith.constant 2 : index
    %198 = memref.load %arg2[%c3_156, %c2_157] : memref<4x9xf32, #tpu.memory_space<smem>>
    %c3_158 = arith.constant 3 : index
    %c0_159 = arith.constant 0 : index
    %c2_160 = arith.constant 2 : index
    %199 = vector.load %arg7[%c3_158, %c0_159, %c2_160] : memref<4x18x18xf32, #tpu.memory_space<vmem>>, vector<1x16x16xf32>
    %200 = vector.shape_cast %199 : vector<1x16x16xf32> to vector<16x16xf32>
    %201 = vector.broadcast %198 : f32 to vector<16x16xf32>
    %202 = arith.mulf %201, %200 : vector<16x16xf32>
    %203 = arith.addf %197, %202 : vector<16x16xf32>
    %c3_161 = arith.constant 3 : index
    %c3_162 = arith.constant 3 : index
    %204 = memref.load %arg2[%c3_161, %c3_162] : memref<4x9xf32, #tpu.memory_space<smem>>
    %c3_163 = arith.constant 3 : index
    %c1_164 = arith.constant 1 : index
    %c0_165 = arith.constant 0 : index
    %205 = vector.load %arg7[%c3_163, %c1_164, %c0_165] : memref<4x18x18xf32, #tpu.memory_space<vmem>>, vector<1x16x16xf32>
    %206 = vector.shape_cast %205 : vector<1x16x16xf32> to vector<16x16xf32>
    %207 = vector.broadcast %204 : f32 to vector<16x16xf32>
    %208 = arith.mulf %207, %206 : vector<16x16xf32>
    %209 = arith.addf %203, %208 : vector<16x16xf32>
    %c3_166 = arith.constant 3 : index
    %c4_167 = arith.constant 4 : index
    %210 = memref.load %arg2[%c3_166, %c4_167] : memref<4x9xf32, #tpu.memory_space<smem>>
    %c3_168 = arith.constant 3 : index
    %c1_169 = arith.constant 1 : index
    %c1_170 = arith.constant 1 : index
    %211 = vector.load %arg7[%c3_168, %c1_169, %c1_170] : memref<4x18x18xf32, #tpu.memory_space<vmem>>, vector<1x16x16xf32>
    %212 = vector.shape_cast %211 : vector<1x16x16xf32> to vector<16x16xf32>
    %213 = vector.broadcast %210 : f32 to vector<16x16xf32>
    %214 = arith.mulf %213, %212 : vector<16x16xf32>
    %215 = arith.addf %209, %214 : vector<16x16xf32>
    %c3_171 = arith.constant 3 : index
    %c5_172 = arith.constant 5 : index
    %216 = memref.load %arg2[%c3_171, %c5_172] : memref<4x9xf32, #tpu.memory_space<smem>>
    %c3_173 = arith.constant 3 : index
    %c1_174 = arith.constant 1 : index
    %c2_175 = arith.constant 2 : index
    %217 = vector.load %arg7[%c3_173, %c1_174, %c2_175] : memref<4x18x18xf32, #tpu.memory_space<vmem>>, vector<1x16x16xf32>
    %218 = vector.shape_cast %217 : vector<1x16x16xf32> to vector<16x16xf32>
    %219 = vector.broadcast %216 : f32 to vector<16x16xf32>
    %220 = arith.mulf %219, %218 : vector<16x16xf32>
    %221 = arith.addf %215, %220 : vector<16x16xf32>
    %c3_176 = arith.constant 3 : index
    %c6_177 = arith.constant 6 : index
    %222 = memref.load %arg2[%c3_176, %c6_177] : memref<4x9xf32, #tpu.memory_space<smem>>
    %c3_178 = arith.constant 3 : index
    %c2_179 = arith.constant 2 : index
    %c0_180 = arith.constant 0 : index
    %223 = vector.load %arg7[%c3_178, %c2_179, %c0_180] : memref<4x18x18xf32, #tpu.memory_space<vmem>>, vector<1x16x16xf32>
    %224 = vector.shape_cast %223 : vector<1x16x16xf32> to vector<16x16xf32>
    %225 = vector.broadcast %222 : f32 to vector<16x16xf32>
    %226 = arith.mulf %225, %224 : vector<16x16xf32>
    %227 = arith.addf %221, %226 : vector<16x16xf32>
    %c3_181 = arith.constant 3 : index
    %c7_182 = arith.constant 7 : index
    %228 = memref.load %arg2[%c3_181, %c7_182] : memref<4x9xf32, #tpu.memory_space<smem>>
    %c3_183 = arith.constant 3 : index
    %c2_184 = arith.constant 2 : index
    %c1_185 = arith.constant 1 : index
    %229 = vector.load %arg7[%c3_183, %c2_184, %c1_185] : memref<4x18x18xf32, #tpu.memory_space<vmem>>, vector<1x16x16xf32>
    %230 = vector.shape_cast %229 : vector<1x16x16xf32> to vector<16x16xf32>
    %231 = vector.broadcast %228 : f32 to vector<16x16xf32>
    %232 = arith.mulf %231, %230 : vector<16x16xf32>
    %233 = arith.addf %227, %232 : vector<16x16xf32>
    %c3_186 = arith.constant 3 : index
    %c8_187 = arith.constant 8 : index
    %234 = memref.load %arg2[%c3_186, %c8_187] : memref<4x9xf32, #tpu.memory_space<smem>>
    %c3_188 = arith.constant 3 : index
    %c2_189 = arith.constant 2 : index
    %c2_190 = arith.constant 2 : index
    %235 = vector.load %arg7[%c3_188, %c2_189, %c2_190] : memref<4x18x18xf32, #tpu.memory_space<vmem>>, vector<1x16x16xf32>
    %236 = vector.shape_cast %235 : vector<1x16x16xf32> to vector<16x16xf32>
    %237 = vector.broadcast %234 : f32 to vector<16x16xf32>
    %238 = arith.mulf %237, %236 : vector<16x16xf32>
    %239 = arith.addf %233, %238 : vector<16x16xf32>
    %c3_191 = arith.constant 3 : index
    %240 = memref.load %arg3[%c3_191] : memref<4xf32, #tpu.memory_space<smem>>
    %241 = vector.broadcast %240 : f32 to vector<16x16xf32>
    %242 = arith.addf %239, %241 : vector<16x16xf32>
    %cst_192 = arith.constant 0.000000e+00 : f32
    %243 = vector.broadcast %cst_192 : f32 to vector<16x16xf32>
    %244 = arith.maximumf %242, %243 : vector<16x16xf32>
    %cst_193 = arith.constant 0.000000e+00 : f32
    %245 = vector.broadcast %cst_193 : f32 to vector<16x16xf32>
    %c0_194 = arith.constant 0 : index
    %c0_195 = arith.constant 0 : index
    %246 = memref.load %arg4[%c0_194, %c0_195] : memref<8x4xf32, #tpu.memory_space<smem>>
    %247 = vector.broadcast %246 : f32 to vector<16x16xf32>
    %248 = arith.mulf %247, %64 : vector<16x16xf32>
    %249 = arith.addf %245, %248 : vector<16x16xf32>
    %c0_196 = arith.constant 0 : index
    %c1_197 = arith.constant 1 : index
    %250 = memref.load %arg4[%c0_196, %c1_197] : memref<8x4xf32, #tpu.memory_space<smem>>
    %251 = vector.broadcast %250 : f32 to vector<16x16xf32>
    %252 = arith.mulf %251, %124 : vector<16x16xf32>
    %253 = arith.addf %249, %252 : vector<16x16xf32>
    %c0_198 = arith.constant 0 : index
    %c2_199 = arith.constant 2 : index
    %254 = memref.load %arg4[%c0_198, %c2_199] : memref<8x4xf32, #tpu.memory_space<smem>>
    %255 = vector.broadcast %254 : f32 to vector<16x16xf32>
    %256 = arith.mulf %255, %184 : vector<16x16xf32>
    %257 = arith.addf %253, %256 : vector<16x16xf32>
    %c0_200 = arith.constant 0 : index
    %c3_201 = arith.constant 3 : index
    %258 = memref.load %arg4[%c0_200, %c3_201] : memref<8x4xf32, #tpu.memory_space<smem>>
    %259 = vector.broadcast %258 : f32 to vector<16x16xf32>
    %260 = arith.mulf %259, %244 : vector<16x16xf32>
    %261 = arith.addf %257, %260 : vector<16x16xf32>
    %c0_202 = arith.constant 0 : index
    %262 = memref.load %arg5[%c0_202] : memref<8xf32, #tpu.memory_space<smem>>
    %263 = vector.broadcast %262 : f32 to vector<16x16xf32>
    %264 = arith.addf %261, %263 : vector<16x16xf32>
    %c0_203 = arith.constant 0 : index
    %c0_204 = arith.constant 0 : index
    %c0_205 = arith.constant 0 : index
    %c0_206 = arith.constant 0 : index
    %265 = vector.load %arg6[%c0_203, %c0_204, %c0_205, %c0_206] : memref<1x8x16x16xf32, #tpu.memory_space<vmem>>, vector<1x1x16x16xf32>
    %266 = vector.shape_cast %265 : vector<1x1x16x16xf32> to vector<16x16xf32>
    %267 = vector.shape_cast %264 : vector<16x16xf32> to vector<1x1x16x16xf32>
    tpu.vector_store %arg6[%c0_203, %c0_204, %c0_205, %c0_206], %267 {strides = array<i32>} : memref<1x8x16x16xf32, #tpu.memory_space<vmem>>, vector<1x1x16x16xf32>,
    %cst_207 = arith.constant 0.000000e+00 : f32
    %268 = vector.broadcast %cst_207 : f32 to vector<16x16xf32>
    %c1_208 = arith.constant 1 : index
    %c0_209 = arith.constant 0 : index
    %269 = memref.load %arg4[%c1_208, %c0_209] : memref<8x4xf32, #tpu.memory_space<smem>>
    %270 = vector.broadcast %269 : f32 to vector<16x16xf32>
    %271 = arith.mulf %270, %64 : vector<16x16xf32>
    %272 = arith.addf %268, %271 : vector<16x16xf32>
    %c1_210 = arith.constant 1 : index
    %c1_211 = arith.constant 1 : index
    %273 = memref.load %arg4[%c1_210, %c1_211] : memref<8x4xf32, #tpu.memory_space<smem>>
    %274 = vector.broadcast %273 : f32 to vector<16x16xf32>
    %275 = arith.mulf %274, %124 : vector<16x16xf32>
    %276 = arith.addf %272, %275 : vector<16x16xf32>
    %c1_212 = arith.constant 1 : index
    %c2_213 = arith.constant 2 : index
    %277 = memref.load %arg4[%c1_212, %c2_213] : memref<8x4xf32, #tpu.memory_space<smem>>
    %278 = vector.broadcast %277 : f32 to vector<16x16xf32>
    %279 = arith.mulf %278, %184 : vector<16x16xf32>
    %280 = arith.addf %276, %279 : vector<16x16xf32>
    %c1_214 = arith.constant 1 : index
    %c3_215 = arith.constant 3 : index
    %281 = memref.load %arg4[%c1_214, %c3_215] : memref<8x4xf32, #tpu.memory_space<smem>>
    %282 = vector.broadcast %281 : f32 to vector<16x16xf32>
    %283 = arith.mulf %282, %244 : vector<16x16xf32>
    %284 = arith.addf %280, %283 : vector<16x16xf32>
    %c1_216 = arith.constant 1 : index
    %285 = memref.load %arg5[%c1_216] : memref<8xf32, #tpu.memory_space<smem>>
    %286 = vector.broadcast %285 : f32 to vector<16x16xf32>
    %287 = arith.addf %284, %286 : vector<16x16xf32>
    %c0_217 = arith.constant 0 : index
    %c1_218 = arith.constant 1 : index
    %c0_219 = arith.constant 0 : index
    %c0_220 = arith.constant 0 : index
    %288 = vector.load %arg6[%c0_217, %c1_218, %c0_219, %c0_220] : memref<1x8x16x16xf32, #tpu.memory_space<vmem>>, vector<1x1x16x16xf32>
    %289 = vector.shape_cast %288 : vector<1x1x16x16xf32> to vector<16x16xf32>
    %290 = vector.shape_cast %287 : vector<16x16xf32> to vector<1x1x16x16xf32>
    tpu.vector_store %arg6[%c0_217, %c1_218, %c0_219, %c0_220], %290 {strides = array<i32>} : memref<1x8x16x16xf32, #tpu.memory_space<vmem>>, vector<1x1x16x16xf32>,
    %cst_221 = arith.constant 0.000000e+00 : f32
    %291 = vector.broadcast %cst_221 : f32 to vector<16x16xf32>
    %c2_222 = arith.constant 2 : index
    %c0_223 = arith.constant 0 : index
    %292 = memref.load %arg4[%c2_222, %c0_223] : memref<8x4xf32, #tpu.memory_space<smem>>
    %293 = vector.broadcast %292 : f32 to vector<16x16xf32>
    %294 = arith.mulf %293, %64 : vector<16x16xf32>
    %295 = arith.addf %291, %294 : vector<16x16xf32>
    %c2_224 = arith.constant 2 : index
    %c1_225 = arith.constant 1 : index
    %296 = memref.load %arg4[%c2_224, %c1_225] : memref<8x4xf32, #tpu.memory_space<smem>>
    %297 = vector.broadcast %296 : f32 to vector<16x16xf32>
    %298 = arith.mulf %297, %124 : vector<16x16xf32>
    %299 = arith.addf %295, %298 : vector<16x16xf32>
    %c2_226 = arith.constant 2 : index
    %c2_227 = arith.constant 2 : index
    %300 = memref.load %arg4[%c2_226, %c2_227] : memref<8x4xf32, #tpu.memory_space<smem>>
    %301 = vector.broadcast %300 : f32 to vector<16x16xf32>
    %302 = arith.mulf %301, %184 : vector<16x16xf32>
    %303 = arith.addf %299, %302 : vector<16x16xf32>
    %c2_228 = arith.constant 2 : index
    %c3_229 = arith.constant 3 : index
    %304 = memref.load %arg4[%c2_228, %c3_229] : memref<8x4xf32, #tpu.memory_space<smem>>
    %305 = vector.broadcast %304 : f32 to vector<16x16xf32>
    %306 = arith.mulf %305, %244 : vector<16x16xf32>
    %307 = arith.addf %303, %306 : vector<16x16xf32>
    %c2_230 = arith.constant 2 : index
    %308 = memref.load %arg5[%c2_230] : memref<8xf32, #tpu.memory_space<smem>>
    %309 = vector.broadcast %308 : f32 to vector<16x16xf32>
    %310 = arith.addf %307, %309 : vector<16x16xf32>
    %c0_231 = arith.constant 0 : index
    %c2_232 = arith.constant 2 : index
    %c0_233 = arith.constant 0 : index
    %c0_234 = arith.constant 0 : index
    %311 = vector.load %arg6[%c0_231, %c2_232, %c0_233, %c0_234] : memref<1x8x16x16xf32, #tpu.memory_space<vmem>>, vector<1x1x16x16xf32>
    %312 = vector.shape_cast %311 : vector<1x1x16x16xf32> to vector<16x16xf32>
    %313 = vector.shape_cast %310 : vector<16x16xf32> to vector<1x1x16x16xf32>
    tpu.vector_store %arg6[%c0_231, %c2_232, %c0_233, %c0_234], %313 {strides = array<i32>} : memref<1x8x16x16xf32, #tpu.memory_space<vmem>>, vector<1x1x16x16xf32>,
    %cst_235 = arith.constant 0.000000e+00 : f32
    %314 = vector.broadcast %cst_235 : f32 to vector<16x16xf32>
    %c3_236 = arith.constant 3 : index
    %c0_237 = arith.constant 0 : index
    %315 = memref.load %arg4[%c3_236, %c0_237] : memref<8x4xf32, #tpu.memory_space<smem>>
    %316 = vector.broadcast %315 : f32 to vector<16x16xf32>
    %317 = arith.mulf %316, %64 : vector<16x16xf32>
    %318 = arith.addf %314, %317 : vector<16x16xf32>
    %c3_238 = arith.constant 3 : index
    %c1_239 = arith.constant 1 : index
    %319 = memref.load %arg4[%c3_238, %c1_239] : memref<8x4xf32, #tpu.memory_space<smem>>
    %320 = vector.broadcast %319 : f32 to vector<16x16xf32>
    %321 = arith.mulf %320, %124 : vector<16x16xf32>
    %322 = arith.addf %318, %321 : vector<16x16xf32>
    %c3_240 = arith.constant 3 : index
    %c2_241 = arith.constant 2 : index
    %323 = memref.load %arg4[%c3_240, %c2_241] : memref<8x4xf32, #tpu.memory_space<smem>>
    %324 = vector.broadcast %323 : f32 to vector<16x16xf32>
    %325 = arith.mulf %324, %184 : vector<16x16xf32>
    %326 = arith.addf %322, %325 : vector<16x16xf32>
    %c3_242 = arith.constant 3 : index
    %c3_243 = arith.constant 3 : index
    %327 = memref.load %arg4[%c3_242, %c3_243] : memref<8x4xf32, #tpu.memory_space<smem>>
    %328 = vector.broadcast %327 : f32 to vector<16x16xf32>
    %329 = arith.mulf %328, %244 : vector<16x16xf32>
    %330 = arith.addf %326, %329 : vector<16x16xf32>
    %c3_244 = arith.constant 3 : index
    %331 = memref.load %arg5[%c3_244] : memref<8xf32, #tpu.memory_space<smem>>
    %332 = vector.broadcast %331 : f32 to vector<16x16xf32>
    %333 = arith.addf %330, %332 : vector<16x16xf32>
    %c0_245 = arith.constant 0 : index
    %c3_246 = arith.constant 3 : index
    %c0_247 = arith.constant 0 : index
    %c0_248 = arith.constant 0 : index
    %334 = vector.load %arg6[%c0_245, %c3_246, %c0_247, %c0_248] : memref<1x8x16x16xf32, #tpu.memory_space<vmem>>, vector<1x1x16x16xf32>
    %335 = vector.shape_cast %334 : vector<1x1x16x16xf32> to vector<16x16xf32>
    %336 = vector.shape_cast %333 : vector<16x16xf32> to vector<1x1x16x16xf32>
    tpu.vector_store %arg6[%c0_245, %c3_246, %c0_247, %c0_248], %336 {strides = array<i32>} : memref<1x8x16x16xf32, #tpu.memory_space<vmem>>, vector<1x1x16x16xf32>,
    %cst_249 = arith.constant 0.000000e+00 : f32
    %337 = vector.broadcast %cst_249 : f32 to vector<16x16xf32>
    %c4_250 = arith.constant 4 : index
    %c0_251 = arith.constant 0 : index
    %338 = memref.load %arg4[%c4_250, %c0_251] : memref<8x4xf32, #tpu.memory_space<smem>>
    %339 = vector.broadcast %338 : f32 to vector<16x16xf32>
    %340 = arith.mulf %339, %64 : vector<16x16xf32>
    %341 = arith.addf %337, %340 : vector<16x16xf32>
    %c4_252 = arith.constant 4 : index
    %c1_253 = arith.constant 1 : index
    %342 = memref.load %arg4[%c4_252, %c1_253] : memref<8x4xf32, #tpu.memory_space<smem>>
    %343 = vector.broadcast %342 : f32 to vector<16x16xf32>
    %344 = arith.mulf %343, %124 : vector<16x16xf32>
    %345 = arith.addf %341, %344 : vector<16x16xf32>
    %c4_254 = arith.constant 4 : index
    %c2_255 = arith.constant 2 : index
    %346 = memref.load %arg4[%c4_254, %c2_255] : memref<8x4xf32, #tpu.memory_space<smem>>
    %347 = vector.broadcast %346 : f32 to vector<16x16xf32>
    %348 = arith.mulf %347, %184 : vector<16x16xf32>
    %349 = arith.addf %345, %348 : vector<16x16xf32>
    %c4_256 = arith.constant 4 : index
    %c3_257 = arith.constant 3 : index
    %350 = memref.load %arg4[%c4_256, %c3_257] : memref<8x4xf32, #tpu.memory_space<smem>>
    %351 = vector.broadcast %350 : f32 to vector<16x16xf32>
    %352 = arith.mulf %351, %244 : vector<16x16xf32>
    %353 = arith.addf %349, %352 : vector<16x16xf32>
    %c4_258 = arith.constant 4 : index
    %354 = memref.load %arg5[%c4_258] : memref<8xf32, #tpu.memory_space<smem>>
    %355 = vector.broadcast %354 : f32 to vector<16x16xf32>
    %356 = arith.addf %353, %355 : vector<16x16xf32>
    %c0_259 = arith.constant 0 : index
    %c4_260 = arith.constant 4 : index
    %c0_261 = arith.constant 0 : index
    %c0_262 = arith.constant 0 : index
    %357 = vector.load %arg6[%c0_259, %c4_260, %c0_261, %c0_262] : memref<1x8x16x16xf32, #tpu.memory_space<vmem>>, vector<1x1x16x16xf32>
    %358 = vector.shape_cast %357 : vector<1x1x16x16xf32> to vector<16x16xf32>
    %359 = vector.shape_cast %356 : vector<16x16xf32> to vector<1x1x16x16xf32>
    tpu.vector_store %arg6[%c0_259, %c4_260, %c0_261, %c0_262], %359 {strides = array<i32>} : memref<1x8x16x16xf32, #tpu.memory_space<vmem>>, vector<1x1x16x16xf32>,
    %cst_263 = arith.constant 0.000000e+00 : f32
    %360 = vector.broadcast %cst_263 : f32 to vector<16x16xf32>
    %c5_264 = arith.constant 5 : index
    %c0_265 = arith.constant 0 : index
    %361 = memref.load %arg4[%c5_264, %c0_265] : memref<8x4xf32, #tpu.memory_space<smem>>
    %362 = vector.broadcast %361 : f32 to vector<16x16xf32>
    %363 = arith.mulf %362, %64 : vector<16x16xf32>
    %364 = arith.addf %360, %363 : vector<16x16xf32>
    %c5_266 = arith.constant 5 : index
    %c1_267 = arith.constant 1 : index
    %365 = memref.load %arg4[%c5_266, %c1_267] : memref<8x4xf32, #tpu.memory_space<smem>>
    %366 = vector.broadcast %365 : f32 to vector<16x16xf32>
    %367 = arith.mulf %366, %124 : vector<16x16xf32>
    %368 = arith.addf %364, %367 : vector<16x16xf32>
    %c5_268 = arith.constant 5 : index
    %c2_269 = arith.constant 2 : index
    %369 = memref.load %arg4[%c5_268, %c2_269] : memref<8x4xf32, #tpu.memory_space<smem>>
    %370 = vector.broadcast %369 : f32 to vector<16x16xf32>
    %371 = arith.mulf %370, %184 : vector<16x16xf32>
    %372 = arith.addf %368, %371 : vector<16x16xf32>
    %c5_270 = arith.constant 5 : index
    %c3_271 = arith.constant 3 : index
    %373 = memref.load %arg4[%c5_270, %c3_271] : memref<8x4xf32, #tpu.memory_space<smem>>
    %374 = vector.broadcast %373 : f32 to vector<16x16xf32>
    %375 = arith.mulf %374, %244 : vector<16x16xf32>
    %376 = arith.addf %372, %375 : vector<16x16xf32>
    %c5_272 = arith.constant 5 : index
    %377 = memref.load %arg5[%c5_272] : memref<8xf32, #tpu.memory_space<smem>>
    %378 = vector.broadcast %377 : f32 to vector<16x16xf32>
    %379 = arith.addf %376, %378 : vector<16x16xf32>
    %c0_273 = arith.constant 0 : index
    %c5_274 = arith.constant 5 : index
    %c0_275 = arith.constant 0 : index
    %c0_276 = arith.constant 0 : index
    %380 = vector.load %arg6[%c0_273, %c5_274, %c0_275, %c0_276] : memref<1x8x16x16xf32, #tpu.memory_space<vmem>>, vector<1x1x16x16xf32>
    %381 = vector.shape_cast %380 : vector<1x1x16x16xf32> to vector<16x16xf32>
    %382 = vector.shape_cast %379 : vector<16x16xf32> to vector<1x1x16x16xf32>
    tpu.vector_store %arg6[%c0_273, %c5_274, %c0_275, %c0_276], %382 {strides = array<i32>} : memref<1x8x16x16xf32, #tpu.memory_space<vmem>>, vector<1x1x16x16xf32>,
    %cst_277 = arith.constant 0.000000e+00 : f32
    %383 = vector.broadcast %cst_277 : f32 to vector<16x16xf32>
    %c6_278 = arith.constant 6 : index
    %c0_279 = arith.constant 0 : index
    %384 = memref.load %arg4[%c6_278, %c0_279] : memref<8x4xf32, #tpu.memory_space<smem>>
    %385 = vector.broadcast %384 : f32 to vector<16x16xf32>
    %386 = arith.mulf %385, %64 : vector<16x16xf32>
    %387 = arith.addf %383, %386 : vector<16x16xf32>
    %c6_280 = arith.constant 6 : index
    %c1_281 = arith.constant 1 : index
    %388 = memref.load %arg4[%c6_280, %c1_281] : memref<8x4xf32, #tpu.memory_space<smem>>
    %389 = vector.broadcast %388 : f32 to vector<16x16xf32>
    %390 = arith.mulf %389, %124 : vector<16x16xf32>
    %391 = arith.addf %387, %390 : vector<16x16xf32>
    %c6_282 = arith.constant 6 : index
    %c2_283 = arith.constant 2 : index
    %392 = memref.load %arg4[%c6_282, %c2_283] : memref<8x4xf32, #tpu.memory_space<smem>>
    %393 = vector.broadcast %392 : f32 to vector<16x16xf32>
    %394 = arith.mulf %393, %184 : vector<16x16xf32>
    %395 = arith.addf %391, %394 : vector<16x16xf32>
    %c6_284 = arith.constant 6 : index
    %c3_285 = arith.constant 3 : index
    %396 = memref.load %arg4[%c6_284, %c3_285] : memref<8x4xf32, #tpu.memory_space<smem>>
    %397 = vector.broadcast %396 : f32 to vector<16x16xf32>
    %398 = arith.mulf %397, %244 : vector<16x16xf32>
    %399 = arith.addf %395, %398 : vector<16x16xf32>
    %c6_286 = arith.constant 6 : index
    %400 = memref.load %arg5[%c6_286] : memref<8xf32, #tpu.memory_space<smem>>
    %401 = vector.broadcast %400 : f32 to vector<16x16xf32>
    %402 = arith.addf %399, %401 : vector<16x16xf32>
    %c0_287 = arith.constant 0 : index
    %c6_288 = arith.constant 6 : index
    %c0_289 = arith.constant 0 : index
    %c0_290 = arith.constant 0 : index
    %403 = vector.load %arg6[%c0_287, %c6_288, %c0_289, %c0_290] : memref<1x8x16x16xf32, #tpu.memory_space<vmem>>, vector<1x1x16x16xf32>
    %404 = vector.shape_cast %403 : vector<1x1x16x16xf32> to vector<16x16xf32>
    %405 = vector.shape_cast %402 : vector<16x16xf32> to vector<1x1x16x16xf32>
    tpu.vector_store %arg6[%c0_287, %c6_288, %c0_289, %c0_290], %405 {strides = array<i32>} : memref<1x8x16x16xf32, #tpu.memory_space<vmem>>, vector<1x1x16x16xf32>,
    %cst_291 = arith.constant 0.000000e+00 : f32
    %406 = vector.broadcast %cst_291 : f32 to vector<16x16xf32>
    %c7_292 = arith.constant 7 : index
    %c0_293 = arith.constant 0 : index
    %407 = memref.load %arg4[%c7_292, %c0_293] : memref<8x4xf32, #tpu.memory_space<smem>>
    %408 = vector.broadcast %407 : f32 to vector<16x16xf32>
    %409 = arith.mulf %408, %64 : vector<16x16xf32>
    %410 = arith.addf %406, %409 : vector<16x16xf32>
    %c7_294 = arith.constant 7 : index
    %c1_295 = arith.constant 1 : index
    %411 = memref.load %arg4[%c7_294, %c1_295] : memref<8x4xf32, #tpu.memory_space<smem>>
    %412 = vector.broadcast %411 : f32 to vector<16x16xf32>
    %413 = arith.mulf %412, %124 : vector<16x16xf32>
    %414 = arith.addf %410, %413 : vector<16x16xf32>
    %c7_296 = arith.constant 7 : index
    %c2_297 = arith.constant 2 : index
    %415 = memref.load %arg4[%c7_296, %c2_297] : memref<8x4xf32, #tpu.memory_space<smem>>
    %416 = vector.broadcast %415 : f32 to vector<16x16xf32>
    %417 = arith.mulf %416, %184 : vector<16x16xf32>
    %418 = arith.addf %414, %417 : vector<16x16xf32>
    %c7_298 = arith.constant 7 : index
    %c3_299 = arith.constant 3 : index
    %419 = memref.load %arg4[%c7_298, %c3_299] : memref<8x4xf32, #tpu.memory_space<smem>>
    %420 = vector.broadcast %419 : f32 to vector<16x16xf32>
    %421 = arith.mulf %420, %244 : vector<16x16xf32>
    %422 = arith.addf %418, %421 : vector<16x16xf32>
    %c7_300 = arith.constant 7 : index
    %423 = memref.load %arg5[%c7_300] : memref<8xf32, #tpu.memory_space<smem>>
    %424 = vector.broadcast %423 : f32 to vector<16x16xf32>
    %425 = arith.addf %422, %424 : vector<16x16xf32>
    %c0_301 = arith.constant 0 : index
    %c7_302 = arith.constant 7 : index
    %c0_303 = arith.constant 0 : index
    %c0_304 = arith.constant 0 : index
    %426 = vector.load %arg6[%c0_301, %c7_302, %c0_303, %c0_304] : memref<1x8x16x16xf32, #tpu.memory_space<vmem>>, vector<1x1x16x16xf32>
    %427 = vector.shape_cast %426 : vector<1x1x16x16xf32> to vector<16x16xf32>
    %428 = vector.shape_cast %425 : vector<16x16xf32> to vector<1x1x16x16xf32>
    tpu.vector_store %arg6[%c0_301, %c7_302, %c0_303, %c0_304], %428 {strides = array<i32>} : memref<1x8x16x16xf32, #tpu.memory_space<vmem>>, vector<1x1x16x16xf32>,
    return
  }
  func.func @transform_0(%arg0: i32) -> (i32, i32, i32, i32) {
    %c0_i32 = arith.constant 0 : i32
    %c0_i32_0 = arith.constant 0 : i32
    %c0_i32_1 = arith.constant 0 : i32
    %c0_i32_2 = arith.constant 0 : i32
    return %arg0, %c0_i32, %c0_i32_0, %c0_i32_1 : i32, i32, i32, i32
  }
  func.func @transform_1(%arg0: i32) -> (i32, i32) {
    %c0_i32 = arith.constant 0 : i32
    %c0_i32_0 = arith.constant 0 : i32
    %c0_i32_1 = arith.constant 0 : i32
    return %c0_i32, %c0_i32_0 : i32, i32
  }
  func.func @transform_2(%arg0: i32) -> i32 {
    %c0_i32 = arith.constant 0 : i32
    %c0_i32_0 = arith.constant 0 : i32
    return %c0_i32 : i32
  }
  func.func @transform_3(%arg0: i32) -> (i32, i32) {
    %c0_i32 = arith.constant 0 : i32
    %c0_i32_0 = arith.constant 0 : i32
    %c0_i32_1 = arith.constant 0 : i32
    return %c0_i32, %c0_i32_0 : i32, i32
  }
  func.func @transform_4(%arg0: i32) -> i32 {
    %c0_i32 = arith.constant 0 : i32
    %c0_i32_0 = arith.constant 0 : i32
    return %c0_i32 : i32
  }
  func.func @transform_5(%arg0: i32) -> (i32, i32, i32, i32) {
    %c0_i32 = arith.constant 0 : i32
    %c0_i32_0 = arith.constant 0 : i32
    %c0_i32_1 = arith.constant 0 : i32
    %c0_i32_2 = arith.constant 0 : i32
    return %arg0, %c0_i32, %c0_i32_0, %c0_i32_1 : i32, i32, i32, i32
  }
}

</mosaic_0001>

<bundles_post_ra>
// kernel: tpu_custom_call.1
= control target key start
LH: loop header
LB: loop body
LE: loop exit
PB: predicated region body
PF: predicated region fallthrough
CT: control target
= control target key end

     0   :  { %s2468_s0 = inlined_call_operand.hbm [shape: f32[2,4,16,16], index: 0, kind: input, shape index: {}]   ;;  %s2469_s1 = inlined_call_operand.vmem [shape: f32[4,9], index: 1, kind: input, shape index: {}]   ;;  %s2470_s2 = inlined_call_operand.vmem [shape: f32[4], index: 2, kind: input, shape index: {}]   ;;  %s2471_s3 = inlined_call_operand.vmem [shape: f32[8,4], index: 3, kind: input, shape index: {}]   ;;  %s2472_s4 = inlined_call_operand.vmem [shape: f32[8], index: 4, kind: input, shape index: {}]   ;;  %s2473_s5 = inlined_call_operand.hbm [shape: f32[2,8,16,16], index: 5, kind: output, shape index: {}]  }
   0x1   :  { %2492 = sst [smem:[#allocation30_spill]] %s2468_s0 }
   0x2   :  { %2493 = sst [smem:[#allocation31_spill]] %s2469_s1 }
   0x3   :  { %2494 = sst [smem:[#allocation32_spill]] %s2470_s2 }
   0x4   :  { %2495 = sst [smem:[#allocation33_spill]] %s2471_s3 }
   0x5   :  { %2496 = sst [smem:[#allocation34_spill]] %s2472_s4 }
   0x6   :  { %2497 = sst [smem:[#allocation35_spill]] %s2473_s5 }
   0x7   :  { %10 = vsyncpa [#allocation4], 0 }
   0x8   :  { %12 = vsyncpa [#allocation4 + $0x1], 0 }
   0x9   :  { %13 = vsyncpa [#allocation6], 0 }
   0xa   :  { %14 = vsyncpa [#allocation9], 0 }
   0xb   :  { %15 = vsyncpa [#allocation12], 0 }
   0xc   :  { %16 = vsyncpa [#allocation5], 0 }
   0xd   :  { %18 = vsyncpa [#allocation5 + $0x1], 0  ;;  %s1616_s18 = smov 0   ;;  %s1618_s19 = smov 0  }
   0xe   :  { %s1620_s20 = smov 0   ;;  %s1622_s21 = smov 0  }
   0xf LB: > { %2498 = sst [smem:[#allocation19_spill]] %s1558_s18  ;;  %s1637_s22 = sadd.s32 4294967295, %s1570_s21   ;;  %s1570_s21 = sphi %s1622_s21, %s2539_s21   ;;  %s1566_s20 = sphi %s1620_s20, %s2542_s20   ;;  %s1562_s19 = sphi %s1618_s19, %s2541_s19   ;;  %s1558_s18 = sphi %s1616_s18, %s2540_s18  }
  0x10   : > { %2499 = sst [smem:[#allocation20_spill]] %s1562_s19  ;;  %s1193_s23 = sadd.s32 4294967294, %s1570_s21  }
  0x11   : > { %2500 = sst [smem:[#allocation21_spill]] %s1566_s20  ;;  %p44_p0 = scmp.ne.s32.totalorder %s1562_s19, %s1558_s18 }
  0x12   : > { %2501 = sst [smem:[#allocation22_spill]] %s1570_s21  ;;  %p2474_p1 = scmp.eq.s32.totalorder %s1637_s22, 0 }
  0x13   : > { %2502 = sst [smem:[#allocation23_spill]] %s1637_s22  ;;  %p158_p3 = scmp.eq.s32.totalorder %s1193_s23, 1 }
  0x14   : > { %p1646_p4 = por %p2474_p1, %p44_p0  ;;  %p1194_p5 = scmp.ge.s32.totalorder %s1570_s21, 1 }
  0x15   : > { %p1651_p6 = por %p158_p3, %p44_p0  ;;  %p165_p7 = scmp.lt.s32.totalorder %s1570_s21, 3 }
  0x16   : > { %s2503_s24 = scalar_select %p1646_p4, 1, 0 }
  0x17   : > { %s2504_s25 = scalar_select %p1651_p6, 1, 0 }
  0x18   : > { %s2506_s2 = sld [smem:[#allocation32_spill]]  ;;  %p1659_p8 = pnand %p1194_p5, %p165_p7 }
  0x19   : > { %2505 = sst [smem:[#allocation24_spill]] %s2504_s25  ;;  %s2508_s1 = sld [smem:[#allocation31_spill]] }
  0x1a   : > { %s2507_s29 = scalar_select %p1659_p8, 1, 0 }
  0x1b   : > { %p1327_p10 = pneg %p1659_p8  ;;  %s2510_s3 = sld [smem:[#allocation33_spill]] }
  0x1c   : > { %s2511_s4 = sld [smem:[#allocation34_spill]] }
  0x1d   : > { %p1671_p11 = pnand %p1327_p10, %p2474_p1 }
  0x1e   : > { %s189_s28 = sshll.u32 %s2506_s2, 4  ;;  %s190_s28 = int_to_ptr.vmem [resolvable:$true] %s189_s28 }
  0x1f   : > { %s178_s7 = sshll.u32 %s2508_s1, 4  ;;  %s1402_s15 = scalar_lea.vmem %s190_s28, 16  ;;  %s179_s7 = int_to_ptr.vmem [resolvable:$true] %s178_s7 }
  0x20   : > { %p1403_p12 = scmp.ne.s32.totalorder %s190_s28, %s1402_s15  ;;  %p1404_p13 = pneg %p1671_p11 }
  0x21   : > { %s200_s11 = sshll.u32 %s2510_s3, 4  ;;  %p1410_p5 = scmp.lt.s32.totalorder %s190_s28, %s190_s28  ;;  %s1678_s11 = int_to_ptr.vmem [resolvable:$true] %s200_s11 }
  0x22   : > { %s211_s14 = sshll.u32 %s2511_s4, 4  ;;  %p1405_p0 = pnand %p1404_p13, %p1403_p12  ;;  %s212_s14 = int_to_ptr.vmem [resolvable:$true] %s211_s14 }
  0x23   : > { %p1411_p7 = scmp.lt.s32.totalorder %s1402_s15, %s1402_s15 }
  0x24   : > { %p1406_p3 = pneg %p1405_p0 }
  0x25   : > { %p1412_p10 = por %p1411_p7, %p1410_p5 }
  0x27   : > { %p1413_p9 = pnand %p1412_p10, %p1406_p3 }
  0x29   : > { %1416 = shalt.err (!%p1413_p9)
}
  0x2a   : > { %s1572_s16 = smov [#allocation8]   ;;  %s1417_s17 = scalar_lea.vmem %s179_s7, 64 }
  0x2b   : > { %1333 = dma.vmem_to_smem (!%p1671_p11), %s190_s28, 16, %s1572_s16, [#allocation9]  }
  0x2c   : > { %p1418_p1 = scmp.ne.s32.totalorder %s179_s7, %s1417_s17  ;;  %p1425_p4 = scmp.lt.s32.totalorder %s179_s7, %s179_s7 }
  0x2d   : > { %p1426_p8 = scmp.lt.s32.totalorder %s1417_s17, %s1417_s17 }
  0x2e   : > { %p1420_p2 = pnand %p1418_p1, %p1404_p13 }
  0x2f   : > { %p1427_p12 = por %p1426_p8, %p1425_p4 }
  0x30   : > { %p1421_p6 = pneg %p1420_p2 }
  0x32   : > { %p1428_p0 = pnand %p1427_p12, %p1421_p6 }
  0x34   : > { %1431 = shalt.err (!%p1428_p0)
}
  0x35   : > { %s1573_s23 = smov [#allocation7]   ;;  %s1432_s26 = scalar_lea.vmem %s1678_s11, 128 }
  0x36   : > { %1330 = dma.vmem_to_smem (!%p1671_p11), %s179_s7, 64, %s1573_s23, [#allocation6]  }
  0x37   : > { %p1433_p9 = scmp.ne.s32.totalorder %s1678_s11, %s1432_s26  ;;  %p1440_p2 = scmp.lt.s32.totalorder %s1678_s11, %s1678_s11 }
  0x38   : > { %p1441_p5 = scmp.lt.s32.totalorder %s1432_s26, %s1432_s26 }
  0x39   : > { %p1435_p3 = pnand %p1433_p9, %p1404_p13 }
  0x3a   : > { %p1442_p4 = por %p1441_p5, %p1440_p2 }
  0x3b   : > { %p1436_p1 = pneg %p1435_p3 }
  0x3d   : > { %p1443_p6 = pnand %p1442_p4, %p1436_p1 }
  0x3f   : > { %1446 = shalt.err (!%p1443_p6)
}
  0x40   : > { %s1574_s27 = smov [#allocation10]   ;;  %s1447_s6 = scalar_lea.vmem %s212_s14, 16 }
  0x41   : > { %1336 = dma.vmem_to_smem (!%p1671_p11), %s1678_s11, 128, %s1574_s27, [#allocation9]  }
  0x42   : > { %p1448_p8 = scmp.ne.s32.totalorder %s212_s14, %s1447_s6  ;;  %p1455_p12 = scmp.lt.s32.totalorder %s212_s14, %s212_s14 }
  0x43   : > { %p1456_p0 = scmp.lt.s32.totalorder %s1447_s6, %s1447_s6 }
  0x44   : > { %p1450_p7 = pnand %p1448_p8, %p1404_p13 }
  0x45   : > { %p1457_p9 = por %p1456_p0, %p1455_p12 }
  0x46   : > { %p1451_p10 = pneg %p1450_p7 }
  0x48   : > { %p1458_p3 = pnand %p1457_p9, %p1451_p10 }
  0x4a   : > { %1461 = shalt.err (!%p1458_p3)
}
  0x4b   : > { %s1575_s7 = smov [#allocation11]   ;;  %s1715_s9 = sadd.s32 1, %s1570_s21  }
  0x4c   : > { %1339 = dma.vmem_to_smem (!%p1671_p11), %s212_s14, 16, %s1575_s7, [#allocation12]  }
  0x4d   : > { %2512 = sst [smem:[#allocation25_spill]] %s1715_s9  ;;  %s28_s10 = ssub.s32 %s1570_s21, %s1715_s9 }
  0x4e   : > { %p29_p13 = scmp.eq.s32.totalorder %s28_s10, 0  ;;  %s31_s11 = sadd.s32 1, %s1566_s20 }
  0x4f   : > { %p38_p1 = scmp.ne.s32.totalorder %s1566_s20, %s1562_s19  ;;  %p39_p2 = scmp.eq.s32.totalorder %s1570_s21, 0 }
  0x50   : > { %s1724_s8 = scalar_select %p29_p13, %s1566_s20, %s31_s11  }
  0x51   : > { %p40_p5 = por %p39_p2, %p38_p1  ;;  %p2514_p4 = scmp.eq.s32.totalorder %s1637_s22, 1 }
  0x52   : > { %2513 = sst [smem:[#allocation26_spill]] %s1724_s8  ;;  %p1352_p8 = scmp.lt.s32.totalorder %s1570_s21, 2 }
  0x53   : > { %p1728_p6 = por %p2514_p4, %p38_p1  ;;  %s222_s13 = sand.u32 1, %s1566_s20  }
  0x54   : > { %s1200_s15 = sshll.u32 %s222_s13, 6  ;;  %s1305_s14 = sshll.u32 %s1570_s21, 10 }
  0x55   : > { %s2515_s12 = scalar_select %p1728_p6, 1, 0 }
  0x56   : > { %s2517_s0 = sld [smem:[#allocation30_spill]]  ;;  %s226_s26 = scalar_lea.vmem [#allocation3], %s1200_s15 }
  0x57   : > { %2516 = sst [smem:[#allocation27_spill]] %s2515_s12  ;;  %s233_s27 = sshll.u32 %s226_s26, 4  ;;  %s1740_s27 = int_to_ptr.vmem [resolvable:$true] %s233_s27 }
  0x58   : > { %p1742_p11 = pnand %p1352_p8, %p40_p5  ;;  %s1746_s30 = scalar_lea.sflag [#allocation4], %s222_s13 }
  0x5a   : > { %p1464_p10 = pneg %p1742_p11 }
  0x5c   : > { %s1738_s23 = scalar_lea.hbm %s2517_s0, %s1305_s14  ;;  %s1467_s11 = scalar_lea.hbm %s2517_s0, 2048 }
  0x5d   : > { %s1462_s6 = scalar_lea.hbm %s1738_s23, 1024  ;;  %p1468_p9 = scmp.lt.u32.totalorder %s1738_s23, %s2517_s0 }
  0x5e   : > { %p1463_p7 = scmp.ne.s32.totalorder %s1738_s23, %s1462_s6  ;;  %p1469_p3 = scmp.lt.u32.totalorder %s1467_s11, %s1462_s6 }
  0x5f   : > { %p1471_p1 = scmp.lt.u32.totalorder %s1462_s6, %s1738_s23 }
  0x60   : > { %p1465_p12 = pnand %p1464_p10, %p1463_p7  ;;  %p1470_p13 = por %p1469_p3, %p1468_p9 }
  0x62   : > { %p1466_p0 = pneg %p1465_p12  ;;  %p1472_p2 = por %p1471_p1, %p1470_p13 }
  0x64   : > { %p1473_p5 = pnand %p1472_p2, %p1466_p0 }
  0x66   : > { %1476 = shalt.err (!%p1473_p5)
}
  0x67   : > { %s1477_s13 = scalar_lea.vmem %s1740_s27, 1024  ;;  %s1576_s16 = smov [#allocation3]  }
  0x68   : > { %p1478_p4 = scmp.ne.s32.totalorder %s1740_s27, %s1477_s13  ;;  %s1482_s17 = sshll.u32 %s1576_s16, 4  ;;  %s1483_s17 = int_to_ptr.vmem [resolvable:$false] %s1482_s17 }
  0x69   : > { %s1484_s26 = scalar_lea.vmem %s1483_s17, 2048  ;;  %p1485_p12 = scmp.lt.s32.totalorder %s1740_s27, %s1483_s17 }
  0x6a   : > { %p1480_p8 = pnand %p1478_p4, %p1464_p10  ;;  %p1486_p9 = scmp.lt.s32.totalorder %s1484_s26, %s1477_s13 }
  0x6c   : > { %p1481_p7 = pneg %p1480_p8  ;;  %p1487_p3 = por %p1486_p9, %p1485_p12 }
  0x6e   : > { %p1488_p13 = pnand %p1487_p3, %p1481_p7 }
  0x70   : > { %1491 = shalt.err (!%p1488_p13)
}
  0x71   : > { %s1577_s6 = smov 128   ;;  %s1578_s7 = smov 8  }
  0x72   : > { %1343 = dma.hbm_to_vmem [thread:$0]  (!%p1742_p11), %s1738_s23, 1024, %s1740_s27, %s1746_s30, %s1577_s6, %s1577_s6, %s1578_s7  }
  0x73   : > { %p2519_p10 = scmp.ne.s32.totalorder %s2507_s29, 0 }
  0x75   : > { %245 = sbr.rel (%p2519_p10) target bundleno = 521 (0x209), region = 40 }
  0x7c   : > { %s1777_s10 = sand.u32 1, %s1562_s19   ;;  %p2520_p0 = scmp.ne.s32.totalorder %s2503_s24, 0 }
  0x7d   : > { %s1204_s11 = sshll.u32 %s1777_s10, 6  ;;  %s248_s15 = scalar_lea.sflag [#allocation4], %s1777_s10 }
  0x7e   : > { %s1781_s14 = scalar_lea.vmem [#allocation3], %s1204_s11 }
  0x7f   : > { %1537 = dma.done.wait (%p2520_p0), %s248_s15, 1024  }
  0x80   : > { %1539 = vsyncadd (%p2520_p0), %s248_s15, 4294966272  ;;  %p2521_p11 = scmp.eq.s32.totalorder %s1637_s22, 0 }
  0x82   : > { %1541 = dma.done.wait (%p2521_p11), [#allocation6], 64   ;;  %p2522_p1 = pmov %p2521_p11 }
  0x84   : > { %1543 = vsyncadd (%p2522_p1), [#allocation6], 4294967232  ;;  %p2523_p2 = pmov %p2522_p1 }
  0x85   : > { %p2524_p5 = pmov %p2522_p1 }
  0x86   : > { %1545 = dma.done.wait (%p2523_p2), [#allocation9], 144  }
  0x87   : > { %1547 = vsyncadd (%p2524_p5), [#allocation9], 4294967152  ;;  %p2525_p4 = pmov %p2522_p1 }
  0x88   : > { %p2526_p8 = pmov %p2522_p1 }
  0x89   : > { %1549 = dma.done.wait (%p2525_p4), [#allocation12], 16  }
  0x8a   : > { %1551 = vsyncadd (%p2526_p8), [#allocation12], 4294967280 }
  0x8b   : > { %272 = sfence }
  0x8c   : > { %v309_v0 = vld [vmem:[%s1781_s14] sm:$0xff]  ;;  %v311_v1 = vld [vmem:[%s1781_s14 + $0x10] sm:$0xff]  ;;  %vm295_vm0 = vcmask 146432   ;;  %s1579_s24 = smov 1   ;;  %vm298_vm1 = vcmask 140288   ;;  %v310_v2 = vld [vmem:[%s1781_s14 + $0x8] sm:$0xff] }
  0x8d   : > { %325 = vrot.lane.b32.xlu0 %v309_v0, %s1579_s24  ;;  %329 = vrot.lane.b32.xlu1 %v311_v1, %s1579_s24  ;;  %v312_v3 = vld [vmem:[%s1781_s14 + $0x18] sm:$0xff]  ;;  %v1580_v4 = vmov 0.0   ;;  %v313_v5 = vld [vmem:[%s1781_s14 + $0x20] sm:$0xff]  ;;  %vm349_vm2 = vcmask 138248   ;;  %s1210_s29 = sld [smem:[#allocation7 + $0x1]]  ;;  %s1809_s23 = sld [smem:[#allocation7 + $0x2]] }
  0x8e   : > { %296 = vst.msk [vmem:[#allocation2] sm:$0xff] %vm295_vm0, %v1580_v4  ;;  %297 = vst.msk [vmem:[#allocation2 + $0x8] sm:$0xff] %vm295_vm0, %v1580_v4  ;;  %v314_v6 = vld [vmem:[%s1781_s14 + $0x28] sm:$0xff]  ;;  %v315_v7 = vld [vmem:[%s1781_s14 + $0x30] sm:$0xff]  ;;  %s1811_s27 = sld [smem:[#allocation7 + $0x81]]  ;;  %s1821_s28 = sld [smem:[#allocation7 + $0x82]] }
  0x8f   : > { %300 = vst.msk [vmem:[#allocation2 + $0x18] sm:$0xff] %vm295_vm0, %v1580_v4  ;;  %301 = vst.msk [vmem:[#allocation2 + $0x20] sm:$0xff] %vm295_vm0, %v1580_v4  ;;  %v316_v8 = vld [vmem:[%s1781_s14 + $0x38] sm:$0xff]  ;;  %s1581_s30 = smov 127   ;;  %s1829_s13 = sld [smem:[#allocation7 + $0x101]]  ;;  %vm845_vm3 = vcmask 130048  }
  0x90   : > { %303 = vst.msk [vmem:[#allocation2 + $0x30] sm:$0xff] %vm295_vm0, %v1580_v4  ;;  %304 = vst.msk [vmem:[#allocation2 + $0x38] sm:$0xff] %vm295_vm0, %v1580_v4  ;;  %s1582_s16 = smov 126   ;;  %s1230_s17 = sld [smem:[#allocation7 + $0x102]] }
  0x91   : > { %306 = vst.msk [vmem:[#allocation2 + $0x48] sm:$0xff] %vm295_vm0, %v1580_v4  ;;  %307 = vst.msk [vmem:[#allocation2 + $0x50] sm:$0xff] %vm295_vm0, %v1580_v4  ;;  %327 = vrot.lane.b32.xlu0 %v310_v2, %s1579_s24  ;;  %331 = vrot.lane.b32.xlu1 %v312_v3, %s1579_s24  ;;  %s1239_s26 = sld [smem:[#allocation7 + $0x181]]  ;;  %s1213_s6 = sld [smem:[#allocation7 + $0x4]] }
  0x92   : > { %299 = vst.msk [vmem:[#allocation2 + $0x10] sm:$0x3] %vm298_vm1, %v1580_v4  ;;  %302 = vst.msk [vmem:[#allocation2 + $0x28] sm:$0x3] %vm298_vm1, %v1580_v4  ;;  %s1222_s7 = sld [smem:[#allocation7 + $0x84]]  ;;  %s1240_s11 = sld [smem:[#allocation7 + $0x182]] }
  0x93   : > { %305 = vst.msk [vmem:[#allocation2 + $0x40] sm:$0x3] %vm298_vm1, %v1580_v4  ;;  %308 = vst.msk [vmem:[#allocation2 + $0x58] sm:$0x3] %vm298_vm1, %v1580_v4  ;;  %v367_v13 = vstv %s1210_s29  ;;  %v381_v18 = vstv %s1809_s23  ;;  %s1214_s15 = sld [smem:[#allocation7 + $0x5]]  ;;  %s1242_s23 = sld [smem:[#allocation7 + $0x184]] }
  0x94   : > { %v482_v21 = vstv %s1811_s27  ;;  %v496_v29 = vstv %s1821_s28  ;;  %s1223_s14 = sld [smem:[#allocation7 + $0x85]]  ;;  %s1216_s27 = sld [smem:[#allocation7 + $0x7]] }
  0x95   : > { %333 = vrot.lane.b32.xlu0 %v313_v5, %s1579_s24  ;;  %335 = vrot.lane.b32.xlu1 %v314_v6, %s1579_s24  ;;  %v597_v31 = vstv %s1829_s13  ;;  %s1233_s29 = sld [smem:[#allocation7 + $0x105]]  ;;  %s1225_s28 = sld [smem:[#allocation7 + $0x87]] }
  0x96   : > { %v611_v36 = vstv %s1230_s17  ;;  %s1243_s13 = sld [smem:[#allocation7 + $0x185]]  ;;  %s1217_s17 = sld [smem:[#allocation7 + $0x8]] }
  0x97   : > { %v712_v41 = vstv %s1239_s26  ;;  %v403_v46 = vstv %s1213_s6  ;;  %s1226_s26 = sld [smem:[#allocation7 + $0x88]]  ;;  %s1235_s6 = sld [smem:[#allocation7 + $0x107]] }
  0x98   : > { %v518_v51 = vstv %s1222_s7  ;;  %v726_v55 = vstv %s1240_s11  ;;  %s1236_s7 = sld [smem:[#allocation7 + $0x108]]  ;;  %s1245_s11 = sld [smem:[#allocation7 + $0x187]] }
  0x99   : > { %337 = vrot.lane.b32.xlu0 %v315_v7, %s1579_s24  ;;  %339 = vrot.lane.b32.xlu1 %v316_v8, %s1579_s24  ;;  %v417_v58 = vstv %s1214_s15  ;;  %s1232_s24 = sld [smem:[#allocation7 + $0x104]]  ;;  %s1246_s15 = sld [smem:[#allocation7 + $0x188]] }
  0x9a   : > { %v532_v61 = vstv %s1223_s14  ;;  %s358_s14 = sld [smem:[#allocation7]]  ;;  %s2046_s0 = sld [smem:[#allocation10 + $0x201]] }
  0x9b   : > { %v647_v5 = vstv %s1233_s29  ;;  %s1218_s29 = sld [smem:[#allocation7 + $0x80]]  ;;  %s2049_s1 = sld [smem:[#allocation10 + $0x281]] }
  0x9c   : > { %s2051_s2 = sld [smem:[#allocation10 + $0x301]]  ;;  %s2055_s4 = sld [smem:[#allocation8 + $0x2]] }
  0x9d   : > { %s2053_s3 = sld [smem:[#allocation10 + $0x381]]  ;;  %s2057_s8 = sld [smem:[#allocation10 + $0x2]] }
  0x9e   : > { %s2059_s20 = sld [smem:[#allocation10 + $0x82]]  ;;  %s2085_s12 = sld [smem:[#allocation8 + $0x3]] }
  0x9f   : > { %v633_v1 = vstv %s1232_s24  ;;  %s1212_s24 = sld [smem:[#allocation7 + $0x3]]  ;;  %s2064_s19 = sld [smem:[#allocation10 + $0x182]] }
  0xa0   : > { %s2068_s9 = sld [smem:[#allocation10 + $0x202]]  ;;  %s2093_s5 = sld [smem:[#allocation10 + $0x83]] }
  0xa1   : > { %s2070_s21 = sld [smem:[#allocation10 + $0x282]]  ;;  %s2095_s22 = sld [smem:[#allocation10 + $0x103]] }
  0xa2   : > { %s2079_s25 = sld [smem:[#allocation10 + $0x302]] }
  0xa3   : > { %s2081_s18 = sld [smem:[#allocation10 + $0x382]] }
  0xa6   : > { %2527 = sst [smem:[#allocation28_spill]] %s2093_s5 }
  0xa7   : > { %2528 = sst [smem:[#allocation29_spill]] %s2095_s22 }
  0xff   : > { %v326_v9 = vpop.permute.xlu0 %325  ;;  %v330_v10 = vpop.permute.xlu1 %329 }
 0x100   : > { %350 = vst.msk [vmem:[#allocation2 + $0x1] sm:$0xff] %vm349_vm2, %v326_v9  ;;  %352 = vst.msk [vmem:[#allocation2 + $0x19] sm:$0xff] %vm349_vm2, %v330_v10  ;;  %v748_v9 = vstv %s1242_s23  ;;  %s1972_s23 = sld [smem:[#allocation7 + $0x83]] }
 0x103   : > { %v328_v11 = vpop.permute.xlu0 %327  ;;  %v332_v12 = vpop.permute.xlu1 %331 }
 0x104   : > { %351 = vst.msk [vmem:[#allocation2 + $0x9] sm:$0xff] %vm349_vm2, %v328_v11  ;;  %353 = vst.msk [vmem:[#allocation2 + $0x21] sm:$0xff] %vm349_vm2, %v332_v12 }
 0x107   : > { %v1815_v14 = vld [vmem:[#allocation2] sm:$0xff]  ;;  %v334_v15 = vpop.permute.xlu0 %333  ;;  %v336_v16 = vpop.permute.xlu1 %335  ;;  %v1826_v20 = vld [vmem:[#allocation2 + $0x18] sm:$0xff] }
 0x108   : > { %v368_v17 = vmul.f32 %v367_v13, %v1815_v14  ;;  %354 = vst.msk [vmem:[#allocation2 + $0x31] sm:$0xff] %vm349_vm2, %v334_v15  ;;  %355 = vst.msk [vmem:[#allocation2 + $0x39] sm:$0xff] %vm349_vm2, %v336_v16  ;;  %v382_v25 = vmul.f32 %v381_v18, %v1815_v14  ;;  %v483_v26 = vmul.f32 %v482_v21, %v1826_v20  ;;  %v1867_v45 = vld [vmem:[#allocation2 + $0x1] sm:$0xff]  ;;  %v1875_v50 = vld [vmem:[#allocation2 + $0x19] sm:$0xff]  ;;  %v439_v15 = vstv %s1216_s27  ;;  %s1238_s27 = sld [smem:[#allocation7 + $0x180]] }
 0x109   : > { %v497_v33 = vmul.f32 %v496_v29, %v1826_v20  ;;  %v404_v48 = vmul.f32 %v403_v46, %v1867_v45  ;;  %v519_v53 = vmul.f32 %v518_v51, %v1875_v50  ;;  %v418_v60 = vmul.f32 %v417_v58, %v1867_v45 }
 0x10a   : > { %372 = vrot.lane.b32.xlu0 %v368_v17, %s1581_s30  ;;  %v533_v63 = vmul.f32 %v532_v61, %v1875_v50 }
 0x10b   : > { %v1824_v19 = vld [vmem:[#allocation2 + $0x8] sm:$0xff]  ;;  %v338_v22 = vpop.permute.xlu0 %337  ;;  %v340_v23 = vpop.permute.xlu1 %339  ;;  %v1839_v28 = vld [vmem:[#allocation2 + $0x20] sm:$0xff] }
 0x10c   : > { %v369_v24 = vmul.f32 %v367_v13, %v1824_v19  ;;  %356 = vst.msk [vmem:[#allocation2 + $0x49] sm:$0xff] %vm349_vm2, %v338_v22  ;;  %357 = vst.msk [vmem:[#allocation2 + $0x51] sm:$0xff] %vm349_vm2, %v340_v23  ;;  %v383_v27 = vmul.f32 %v381_v18, %v1824_v19  ;;  %v484_v32 = vmul.f32 %v482_v21, %v1839_v28  ;;  %v1873_v49 = vld [vmem:[#allocation2 + $0x9] sm:$0xff]  ;;  %v1881_v54 = vld [vmem:[#allocation2 + $0x21] sm:$0xff]  ;;  %v554_v22 = vstv %s1225_s28  ;;  %s1241_s28 = sld [smem:[#allocation7 + $0x183]] }
 0x10d   : > { %v498_v37 = vmul.f32 %v496_v29, %v1839_v28  ;;  %v405_v52 = vmul.f32 %v403_v46, %v1873_v49  ;;  %v520_v56 = vmul.f32 %v518_v51, %v1881_v54  ;;  %v419_v62 = vmul.f32 %v417_v58, %v1873_v49  ;;  %v1915_v13 = vld [vmem:[#allocation2 + $0x2] sm:$0xff]  ;;  %v1921_v18 = vld [vmem:[#allocation2 + $0xa] sm:$0xff]  ;;  %v1923_v21 = vld [vmem:[#allocation2 + $0x1a] sm:$0xff] }
 0x10e   : > { %374 = vrot.lane.b32.xlu1 %v369_v24, %s1581_s30  ;;  %386 = vrot.lane.b32.xlu0 %v382_v25, %s1582_s16  ;;  %v534_v2 = vmul.f32 %v532_v61, %v1881_v54  ;;  %v440_v17 = vmul.f32 %v439_v15, %v1915_v13  ;;  %v441_v23 = vmul.f32 %v439_v15, %v1921_v18  ;;  %v1929_v25 = vld [vmem:[#allocation2 + $0x22] sm:$0xff]  ;;  %v683_v46 = vstv %s1236_s7  ;;  %s2016_s7 = sld [smem:[#allocation8]] }
 0x10f   : > { %v1844_v30 = vld [vmem:[#allocation2 + $0x30] sm:$0xff]  ;;  %v1852_v35 = vld [vmem:[#allocation2 + $0x38] sm:$0xff]  ;;  %v555_v24 = vmul.f32 %v554_v22, %v1923_v21  ;;  %v361_v61 = vstv %s358_s14  ;;  %s2024_s14 = sld [smem:[#allocation10 + $0x100]] }
 0x110   : > { %v598_v34 = vmul.f32 %v597_v31, %v1844_v30  ;;  %v599_v38 = vmul.f32 %v597_v31, %v1852_v35  ;;  %v612_v39 = vmul.f32 %v611_v36, %v1844_v30  ;;  %v613_v44 = vmul.f32 %v611_v36, %v1852_v35  ;;  %v1895_v0 = vld [vmem:[#allocation2 + $0x31] sm:$0xff]  ;;  %v1901_v4 = vld [vmem:[#allocation2 + $0x39] sm:$0xff] }
 0x111   : > { %v634_v3 = vmul.f32 %v633_v1, %v1895_v0  ;;  %v635_v6 = vmul.f32 %v633_v1, %v1901_v4  ;;  %v648_v7 = vmul.f32 %v647_v5, %v1895_v0  ;;  %v649_v10 = vmul.f32 %v647_v5, %v1901_v4 }
 0x112   : > { %388 = vrot.lane.b32.xlu1 %v383_v27, %s1582_s16  ;;  %487 = vrot.lane.b32.xlu0 %v483_v26, %s1581_s30  ;;  %v762_v26 = vstv %s1243_s13  ;;  %v556_v27 = vmul.f32 %v554_v22, %v1929_v25  ;;  %v453_v31 = vstv %s1217_s17  ;;  %s1986_s13 = sld [smem:[#allocation7 + $0x6]] }
 0x113   : > { %v1859_v40 = vld [vmem:[#allocation2 + $0x48] sm:$0xff]  ;;  %v1864_v43 = vld [vmem:[#allocation2 + $0x50] sm:$0xff]  ;;  %v455_v36 = vmul.f32 %v453_v31, %v1921_v18  ;;  %s1989_s17 = sld [smem:[#allocation7 + $0x86]] }
 0x114   : > { %v713_v42 = vmul.f32 %v712_v41, %v1859_v40  ;;  %v714_v47 = vmul.f32 %v712_v41, %v1864_v43  ;;  %v727_v57 = vmul.f32 %v726_v55, %v1859_v40  ;;  %v728_v59 = vmul.f32 %v726_v55, %v1864_v43  ;;  %v1907_v8 = vld [vmem:[#allocation2 + $0x49] sm:$0xff]  ;;  %v1913_v12 = vld [vmem:[#allocation2 + $0x51] sm:$0xff] }
 0x115   : > { %v749_v11 = vmul.f32 %v748_v9, %v1907_v8  ;;  %v750_v16 = vmul.f32 %v748_v9, %v1913_v12  ;;  %v763_v29 = vmul.f32 %v762_v26, %v1907_v8  ;;  %v1955_v51 = vld [vmem:[#allocation2 + $0x4a] sm:$0xff] }
 0x116   : > { %489 = vrot.lane.b32.xlu1 %v484_v32, %s1581_s30  ;;  %501 = vrot.lane.b32.xlu0 %v497_v33, %s1582_s16  ;;  %v764_v32 = vmul.f32 %v762_v26, %v1913_v12  ;;  %v454_v33 = vmul.f32 %v453_v31, %v1915_v13  ;;  %v512_v26 = vstv %s1972_s23  ;;  %s2030_s23 = sld [smem:[#allocation10 + $0x280]] }
 0x11a   : > { %503 = vrot.lane.b32.xlu1 %v498_v37, %s1582_s16  ;;  %602 = vrot.lane.b32.xlu0 %v598_v34, %s1581_s30  ;;  %v568_v34 = vstv %s1226_s26  ;;  %s1234_s26 = sld [smem:[#allocation7 + $0x106]] }
 0x11b   : > { %v569_v37 = vmul.f32 %v568_v34, %v1923_v21  ;;  %v570_v41 = vmul.f32 %v568_v34, %v1929_v25 }
 0x11e   : > { %604 = vrot.lane.b32.xlu1 %v599_v38, %s1581_s30  ;;  %616 = vrot.lane.b32.xlu0 %v612_v39, %s1582_s16  ;;  %v1943_v38 = vld [vmem:[#allocation2 + $0x32] sm:$0xff]  ;;  %v669_v39 = vstv %s1235_s6  ;;  %s2014_s6 = sld [smem:[#allocation7 + $0x186]] }
 0x122   : > { %618 = vrot.lane.b32.xlu1 %v613_v44, %s1582_s16  ;;  %717 = vrot.lane.b32.xlu0 %v713_v42, %s1581_s30  ;;  %v670_v42 = vmul.f32 %v669_v39, %v1943_v38  ;;  %v1949_v44 = vld [vmem:[#allocation2 + $0x3a] sm:$0xff] }
 0x126   : > { %719 = vrot.lane.b32.xlu1 %v714_v47, %s1581_s30  ;;  %408 = vrot.lane.b32.xlu0 %v404_v48, %s1581_s30  ;;  %v671_v47 = vmul.f32 %v669_v39, %v1949_v44  ;;  %v684_v48 = vmul.f32 %v683_v46, %v1943_v38 }
 0x12a   : > { %410 = vrot.lane.b32.xlu1 %v405_v52, %s1581_s30  ;;  %523 = vrot.lane.b32.xlu0 %v519_v53, %s1581_s30  ;;  %v784_v52 = vstv %s1245_s11  ;;  %v685_v53 = vmul.f32 %v683_v46, %v1949_v44  ;;  %s2020_s11 = sld [smem:[#allocation10]] }
 0x12b   : > { %v785_v55 = vmul.f32 %v784_v52, %v1955_v51 }
 0x12e   : > { %525 = vrot.lane.b32.xlu1 %v520_v56, %s1581_s30  ;;  %731 = vrot.lane.b32.xlu0 %v727_v57, %s1582_s16  ;;  %v1961_v56 = vld [vmem:[#allocation2 + $0x52] sm:$0xff]  ;;  %v798_v57 = vstv %s1246_s15  ;;  %s2022_s15 = sld [smem:[#allocation10 + $0x80]] }
 0x12f   : > { %v786_v58 = vmul.f32 %v784_v52, %v1961_v56 }
 0x132   : > { %733 = vrot.lane.b32.xlu1 %v728_v59, %s1582_s16  ;;  %422 = vrot.lane.b32.xlu0 %v418_v60, %s1582_s16  ;;  %v799_v59 = vmul.f32 %v798_v57, %v1955_v51  ;;  %v800_v60 = vmul.f32 %v798_v57, %v1961_v56 }
 0x136   : > { %424 = vrot.lane.b32.xlu1 %v419_v62, %s1582_s16  ;;  %537 = vrot.lane.b32.xlu0 %v533_v63, %s1582_s16  ;;  %v362_v62 = vmul.f32 %v361_v61, %v1815_v14 }
 0x13a   : > { %539 = vrot.lane.b32.xlu1 %v534_v2, %s1582_s16  ;;  %638 = vrot.lane.b32.xlu0 %v634_v3, %s1581_s30  ;;  %v397_v2 = vstv %s1212_s24  ;;  %v363_v3 = vmul.f32 %v361_v61, %v1824_v19  ;;  %s2026_s24 = sld [smem:[#allocation10 + $0x180]] }
 0x13e   : > { %640 = vrot.lane.b32.xlu1 %v635_v6, %s1581_s30  ;;  %652 = vrot.lane.b32.xlu0 %v648_v7, %s1582_s16  ;;  %v476_v7 = vstv %s1218_s29  ;;  %s2028_s29 = sld [smem:[#allocation10 + $0x200]] }
 0x13f   : > { %v477_v15 = vmul.f32 %v476_v7, %v1826_v20  ;;  %v478_v19 = vmul.f32 %v476_v7, %v1839_v28 }
 0x142   : > { %654 = vrot.lane.b32.xlu1 %v649_v10, %s1582_s16  ;;  %753 = vrot.lane.b32.xlu0 %v749_v11, %s1581_s30  ;;  %v398_v11 = vmul.f32 %v397_v2, %v1867_v45  ;;  %v513_v45 = vmul.f32 %v512_v26, %v1875_v50 }
 0x146   : > { %755 = vrot.lane.b32.xlu1 %v750_v16, %s1581_s30  ;;  %444 = vrot.lane.b32.xlu0 %v440_v17, %s1581_s30 }
 0x14a   : > { %446 = vrot.lane.b32.xlu1 %v441_v23, %s1581_s30  ;;  %559 = vrot.lane.b32.xlu0 %v555_v24, %s1581_s30  ;;  %v399_v24 = vmul.f32 %v397_v2, %v1873_v49  ;;  %v514_v49 = vmul.f32 %v512_v26, %v1881_v54  ;;  %v742_v2 = vstv %s1241_s28  ;;  %s2038_s28 = sld [smem:[#allocation10 + $0x1]] }
 0x14e   : > { %561 = vrot.lane.b32.xlu1 %v556_v27, %s1581_s30  ;;  %767 = vrot.lane.b32.xlu0 %v763_v29, %s1582_s16 }
 0x152   : > { %769 = vrot.lane.b32.xlu1 %v764_v32, %s1582_s16  ;;  %458 = vrot.lane.b32.xlu0 %v454_v33, %s1582_s16 }
 0x156   : > { %460 = vrot.lane.b32.xlu1 %v455_v36, %s1582_s16  ;;  %573 = vrot.lane.b32.xlu0 %v569_v37, %s1582_s16 }
 0x15a   : > { %575 = vrot.lane.b32.xlu1 %v570_v41, %s1582_s16  ;;  %674 = vrot.lane.b32.xlu0 %v670_v42, %s1581_s30 }
 0x15e   : > { %676 = vrot.lane.b32.xlu1 %v671_v47, %s1581_s30  ;;  %688 = vrot.lane.b32.xlu0 %v684_v48, %s1582_s16 }
 0x162   : > { %690 = vrot.lane.b32.xlu1 %v685_v53, %s1582_s16  ;;  %789 = vrot.lane.b32.xlu0 %v785_v55, %s1581_s30 }
 0x166   : > { %791 = vrot.lane.b32.xlu1 %v786_v58, %s1581_s30  ;;  %803 = vrot.lane.b32.xlu0 %v799_v59, %s1582_s16  ;;  %s1228_s30 = sld [smem:[#allocation7 + $0x100]] }
 0x16a   : > { %805 = vrot.lane.b32.xlu1 %v800_v60, %s1582_s16  ;;  %s1231_s16 = sld [smem:[#allocation7 + $0x103]] }
 0x16c   : > { %v591_v34 = vstv %s1228_s30  ;;  %s2032_s30 = sld [smem:[#allocation10 + $0x300]] }
 0x16d   : > { %v592_v41 = vmul.f32 %v591_v34, %v1844_v30  ;;  %v593_v52 = vmul.f32 %v591_v34, %v1852_v35 }
 0x170   : > { %v627_v42 = vstv %s1231_s16  ;;  %s2034_s16 = sld [smem:[#allocation10 + $0x380]] }
 0x171   : > { %v628_v55 = vmul.f32 %v627_v42, %v1895_v0  ;;  %v629_v30 = vmul.f32 %v627_v42, %v1901_v4 }
 0x17c   : > { %v373_v63 = vpop.permute.xlu0 %372 }
 0x17d   : > { %v378_v1 = vadd.f32 %v373_v63, %v362_v62  ;;  %v706_v63 = vstv %s1238_s27  ;;  %s2036_s27 = sld [smem:[#allocation8 + $0x1]] }
 0x17e   : > { %v707_v0 = vmul.f32 %v706_v63, %v1859_v40  ;;  %v708_v4 = vmul.f32 %v706_v63, %v1864_v43 }
 0x180   : > { %v375_v5 = vpop.permute.xlu1 %374  ;;  %v387_v6 = vpop.permute.xlu0 %386 }
 0x181   : > { %v379_v9 = vadd.f32 %v375_v5, %v363_v3  ;;  %v392_v10 = vadd.f32 %v387_v6, %v378_v1 }
 0x183   : > { %v400_v16 = vadd.f32 %v398_v11, %v392_v10  ;;  %v433_v10 = vstv %s1986_s13  ;;  %s2040_s13 = sld [smem:[#allocation10 + $0x81]] }
 0x184   : > { %v389_v14 = vpop.permute.xlu1 %388  ;;  %v488_v17 = vpop.permute.xlu0 %487  ;;  %v434_v26 = vmul.f32 %v433_v10, %v1915_v13  ;;  %v435_v34 = vmul.f32 %v433_v10, %v1921_v18  ;;  %v911_v10 = vstv %s2026_s24  ;;  %s2186_s24 = sld [smem:[#allocation10 + $0x303]] }
 0x185   : > { %v393_v22 = vadd.f32 %v389_v14, %v379_v9  ;;  %v493_v23 = vadd.f32 %v488_v17, %v477_v15  ;;  %v743_v9 = vmul.f32 %v742_v2, %v1907_v8 }
 0x187   : > { %v401_v27 = vadd.f32 %v399_v24, %v393_v22  ;;  %v744_v24 = vmul.f32 %v742_v2, %v1913_v12 }
 0x188   : > { %v490_v29 = vpop.permute.xlu1 %489  ;;  %v502_v31 = vpop.permute.xlu0 %501 }
 0x189   : > { %v494_v32 = vadd.f32 %v490_v29, %v478_v19  ;;  %v507_v33 = vadd.f32 %v502_v31, %v493_v23  ;;  %v548_v19 = vstv %s1989_s17  ;;  %s2042_s17 = sld [smem:[#allocation10 + $0x101]] }
 0x18b   : > { %v515_v20 = vadd.f32 %v513_v45, %v507_v33 }
 0x18c   : > { %v504_v36 = vpop.permute.xlu1 %503  ;;  %v603_v37 = vpop.permute.xlu0 %602 }
 0x18d   : > { %v508_v39 = vadd.f32 %v504_v36, %v494_v32  ;;  %v608_v46 = vadd.f32 %v603_v37, %v592_v41  ;;  %v549_v36 = vmul.f32 %v548_v19, %v1923_v21  ;;  %v550_v41 = vmul.f32 %v548_v19, %v1929_v25 }
 0x18f   : > { %v516_v47 = vadd.f32 %v514_v49, %v508_v39  ;;  %v663_v49 = vstv %s1234_s26  ;;  %s2044_s26 = sld [smem:[#allocation10 + $0x181]] }
 0x190   : > { %v605_v28 = vpop.permute.xlu1 %604  ;;  %v617_v48 = vpop.permute.xlu0 %616  ;;  %v664_v18 = vmul.f32 %v663_v49, %v1943_v38 }
 0x191   : > { %v622_v53 = vadd.f32 %v617_v48, %v608_v46  ;;  %v609_v50 = vadd.f32 %v605_v28, %v593_v52 }
 0x193   : > { %v630_v57 = vadd.f32 %v628_v55, %v622_v53 }
 0x194   : > { %v619_v58 = vpop.permute.xlu1 %618  ;;  %v718_v59 = vpop.permute.xlu0 %717 }
 0x195   : > { %v623_v60 = vadd.f32 %v619_v58, %v609_v50  ;;  %v723_v3 = vadd.f32 %v718_v59, %v707_v0  ;;  %v665_v58 = vmul.f32 %v663_v49, %v1949_v44 }
 0x197   : > { %v631_v54 = vadd.f32 %v629_v30, %v623_v60  ;;  %v778_v60 = vstv %s2014_s6  ;;  %s2062_s6 = sld [smem:[#allocation10 + $0x102]] }
 0x198   : > { %v720_v61 = vpop.permute.xlu1 %719  ;;  %v409_v62 = vpop.permute.xlu0 %408  ;;  %v779_v63 = vmul.f32 %v778_v60, %v1955_v51  ;;  %v780_v2 = vmul.f32 %v778_v60, %v1961_v56  ;;  %v973_v56 = vstv %s2030_s23  ;;  %s2253_s23 = sld [smem:[#allocation11 + $0x7]] }
 0x199   : > { %v724_v11 = vadd.f32 %v720_v61, %v708_v4  ;;  %v414_v15 = vadd.f32 %v409_v62, %v400_v16  ;;  %v880_v4 = vstv %s2024_s14  ;;  %s2176_s14 = sld [smem:[#allocation10 + $0x283]] }
 0x19c   : > { %v411_v35 = vpop.permute.xlu1 %410  ;;  %v524_v1 = vpop.permute.xlu0 %523 }
 0x19d   : > { %v415_v29 = vadd.f32 %v411_v35, %v401_v27  ;;  %v529_v31 = vadd.f32 %v524_v1, %v515_v20 }
 0x1a0   : > { %v526_v5 = vpop.permute.xlu1 %525  ;;  %v732_v6 = vpop.permute.xlu0 %731 }
 0x1a1   : > { %v737_v7 = vadd.f32 %v732_v6, %v723_v3  ;;  %v530_v37 = vadd.f32 %v526_v5, %v516_v47  ;;  %v467_v3 = vstv %s2016_s7  ;;  %v818_v5 = vstv %s2020_s11  ;;  %s2087_s7 = sld [smem:[#allocation10 + $0x3]] }
 0x1a2   : > { %v849_v6 = vstv %s2022_s15  ;;  %s2164_s11 = sld [smem:[#allocation10 + $0x183]] }
 0x1a3   : > { %v745_v14 = vadd.f32 %v743_v9, %v737_v7  ;;  %s2174_s15 = sld [smem:[#allocation10 + $0x203]] }
 0x1a4   : > { %v734_v17 = vpop.permute.xlu1 %733  ;;  %v423_v22 = vpop.permute.xlu0 %422 }
 0x1a5   : > { %v738_v23 = vadd.f32 %v734_v17, %v724_v11  ;;  %v428_v40 = vadd.f32 %v423_v22, %v414_v15  ;;  %v942_v11 = vstv %s2028_s29  ;;  %v1035_v17 = vstv %s2034_s16  ;;  %s2204_s29 = sld [smem:[#allocation11 + $0x2]] }
 0x1a6   : > { %v582_v22 = vstv %s2036_s27  ;;  %s2188_s27 = sld [smem:[#allocation10 + $0x383]] }
 0x1a7   : > { %v1997_v43 = vadd.f32 %v744_v24, %v738_v23  ;;  %v1999_v32 = vadd.f32 %v434_v26, %v428_v40 }
 0x1a8   : > { %v425_v8 = vpop.permute.xlu1 %424  ;;  %v538_v33 = vpop.permute.xlu0 %537 }
 0x1a9   : > { %v429_v16 = vadd.f32 %v425_v8, %v415_v29  ;;  %v543_v45 = vadd.f32 %v538_v33, %v529_v31  ;;  %v824_v29 = vstv %s2038_s28  ;;  %v855_v31 = vstv %s2040_s13  ;;  %s1583_s13 = smov [#allocation13]  }
 0x1ab   : > { %v2003_v12 = vadd.f32 %v435_v34, %v429_v16  ;;  %v2005_v13 = vadd.f32 %v549_v36, %v543_v45  ;;  %v948_v16 = vstv %s2046_s0  ;;  %v979_v45 = vstv %s2049_s1  ;;  %s2238_s0 = sld [smem:[#allocation11 + $0x3]]  ;;  %s2243_s1 = sld [smem:[#allocation11 + $0x4]] }
 0x1ac   : > { %v540_v39 = vpop.permute.xlu1 %539  ;;  %v639_v27 = vpop.permute.xlu0 %638  ;;  %v1010_v36 = vstv %s2051_s2  ;;  %s2245_s2 = sld [smem:[#allocation11 + $0x5]] }
 0x1ad   : > { %v544_v20 = vadd.f32 %v540_v39, %v530_v37  ;;  %v644_v42 = vadd.f32 %v639_v27, %v630_v57  ;;  %v1041_v37 = vstv %s2053_s3  ;;  %s2251_s3 = sld [smem:[#allocation11 + $0x6]] }
 0x1af   : > { %v2008_v46 = vadd.f32 %v550_v41, %v544_v20  ;;  %v861_v20 = vstv %s2059_s20  ;;  %v892_v41 = vstv %s2062_s6  ;;  %s2531_s20 = sld [smem:[#allocation23_spill]] }
 0x1b0   : > { %v641_v28 = vpop.permute.xlu1 %640  ;;  %v653_v48 = vpop.permute.xlu0 %652 }
 0x1b1   : > { %v658_v52 = vadd.f32 %v653_v48, %v644_v42  ;;  %v645_v21 = vadd.f32 %v641_v28, %v631_v54  ;;  %v923_v28 = vstv %s2064_s19  ;;  %v954_v48 = vstv %s2068_s9 }
 0x1b3   : > { %v2011_v47 = vadd.f32 %v664_v18, %v658_v52  ;;  %v985_v52 = vstv %s2070_s21  ;;  %v1016_v18 = vstv %s2079_s25 }
 0x1b4   : > { %v655_v53 = vpop.permute.xlu1 %654  ;;  %v754_v55 = vpop.permute.xlu0 %753 }
 0x1b5   : > { %v659_v50 = vadd.f32 %v655_v53, %v645_v21  ;;  %v759_v30 = vadd.f32 %v754_v55, %v745_v14  ;;  %v1004_v14 = vstv %s2032_s30  ;;  %v1047_v55 = vstv %s2081_s18  ;;  %s1209_s18 = sshll.u32 %s1777_s10, 7  ;;  %s1306_s21 = sshll.u32 %s2531_s20, 11 }
 0x1b6   : > { %s2351_s19 = scalar_lea.vmem [#allocation13], %s1209_s18 }
 0x1b7   : > { %v2018_v25 = vadd.f32 %v665_v58, %v659_v50  ;;  %v812_v50 = vstv %s2085_s12  ;;  %v836_v58 = vstv %s2087_s7  ;;  %s1079_s25 = sshll.u32 %s2351_s19, 4  ;;  %s2532_s12 = sld [smem:[#allocation35_spill]]  ;;  %s2400_s25 = int_to_ptr.vmem [resolvable:$true] %s1079_s25 }
 0x1b8   : > { %v756_v57 = vpop.permute.xlu1 %755  ;;  %v445_v59 = vpop.permute.xlu0 %444  ;;  %s1492_s28 = scalar_lea.vmem %s2400_s25, 2048 }
 0x1b9   : > { %v760_v35 = vadd.f32 %v756_v57, %v1997_v43  ;;  %v450_v1 = vadd.f32 %v445_v59, %v1999_v32  ;;  %v886_v43 = vstv %s2042_s17  ;;  %v917_v32 = vstv %s2044_s26  ;;  %p1493_p7 = scmp.ne.s32.totalorder %s2400_s25, %s1492_s28  ;;  %s1496_s17 = sshll.u32 %s1583_s13, 4  ;;  %s1497_s17 = int_to_ptr.vmem [resolvable:$false] %s1496_s17 }
 0x1ba   : > { %v867_v57 = vstv %s2093_s5  ;;  %v898_v59 = vstv %s2095_s22  ;;  %s2196_s22 = sld [smem:[#allocation11]]  ;;  %s2198_s5 = sld [smem:[#allocation11 + $0x1]] }
 0x1bb   : > { %p1494_p12 = pnand %p1493_p7, %p1728_p6  ;;  %s1498_s26 = scalar_lea.vmem %s1497_s17, 4096 }
 0x1bc   : > { %v447_v38 = vpop.permute.xlu1 %446  ;;  %v560_v44 = vpop.permute.xlu0 %559  ;;  %p1499_p3 = scmp.lt.s32.totalorder %s2400_s25, %s1497_s17  ;;  %p1500_p13 = scmp.lt.s32.totalorder %s1498_s26, %s1492_s28 }
 0x1bd   : > { %v451_v23 = vadd.f32 %v447_v38, %v2003_v12  ;;  %v565_v40 = vadd.f32 %v560_v44, %v2005_v13  ;;  %v697_v12 = vstv %s2055_s4  ;;  %v830_v13 = vstv %s2057_s8  ;;  %s2398_s16 = scalar_lea.hbm %s2532_s12, %s1306_s21  ;;  %p1495_p9 = pneg %p1494_p12 }
 0x1be   : > { %p1501_p10 = por %p1500_p13, %p1499_p3 }
 0x1c0   : > { %v562_v54 = vpop.permute.xlu1 %561  ;;  %v768_v61 = vpop.permute.xlu0 %767  ;;  %p1502_p0 = pnand %p1501_p10, %p1495_p9 }
 0x1c1   : > { %v773_v62 = vadd.f32 %v768_v61, %v759_v30  ;;  %v566_v39 = vadd.f32 %v562_v54, %v2008_v46 }
 0x1c3   : > { %v2072_v0 = vadd.f32 %v779_v63, %v773_v62 }
 0x1c4   : > { %v770_v51 = vpop.permute.xlu1 %769  ;;  %v459_v7 = vpop.permute.xlu0 %458 }
 0x1c5   : > { %v774_v9 = vadd.f32 %v770_v51, %v760_v35  ;;  %v464_v15 = vadd.f32 %v459_v7, %v450_v1 }
 0x1c7   : > { %v468_v24 = vadd.f32 %v467_v3, %v464_v15  ;;  %v2099_v26 = vadd.f32 %v780_v2, %v774_v9 }
 0x1c8   : > { %v461_v19 = vpop.permute.xlu1 %460  ;;  %v574_v8 = vpop.permute.xlu0 %573 }
 0x1c9   : > { %v465_v33 = vadd.f32 %v461_v19, %v451_v23  ;;  %v579_v34 = vadd.f32 %v574_v8, %v565_v40  ;;  %v470_v27 = vmax.f32 %v468_v24, 0.0 }
 0x1cb   : > { %v469_v21 = vadd.f32 %v467_v3, %v465_v33  ;;  %v583_v53 = vadd.f32 %v582_v22, %v579_v34  ;;  %v819_v38 = vmul.f32 %v818_v5, %v470_v27  ;;  %v850_v44 = vmul.f32 %v849_v6, %v470_v27 }
 0x1cc   : > { %v576_v49 = vpop.permute.xlu1 %575  ;;  %v675_v42 = vpop.permute.xlu0 %674  ;;  %v881_v54 = vmul.f32 %v880_v4, %v470_v27  ;;  %v912_v61 = vmul.f32 %v911_v10, %v470_v27  ;;  %v943_v62 = vmul.f32 %v942_v11, %v470_v27  ;;  %v974_v63 = vmul.f32 %v973_v56, %v470_v27 }
 0x1cd   : > { %v580_v46 = vadd.f32 %v576_v49, %v566_v39  ;;  %v471_v60 = vmax.f32 %v469_v21, 0.0  ;;  %v585_v30 = vmax.f32 %v583_v53, 0.0  ;;  %v1005_v2 = vmul.f32 %v1004_v14, %v470_v27 }
 0x1ce   : > { %v1036_v51 = vmul.f32 %v1035_v17, %v470_v27  ;;  %v680_v7 = vadd.f32 %v675_v42, %v2011_v47 }
 0x1cf   : > { %v584_v3 = vadd.f32 %v582_v22, %v580_v46  ;;  %v820_v9 = vmul.f32 %v818_v5, %v471_v60  ;;  %v851_v15 = vmul.f32 %v849_v6, %v471_v60  ;;  %v882_v23 = vmul.f32 %v880_v4, %v471_v60 }
 0x1d0   : > { %v677_v35 = vpop.permute.xlu1 %676  ;;  %v689_v1 = vpop.permute.xlu0 %688  ;;  %v913_v40 = vmul.f32 %v911_v10, %v471_v60  ;;  %v825_v24 = vmul.f32 %v824_v29, %v585_v30  ;;  %v856_v19 = vmul.f32 %v855_v31, %v585_v30  ;;  %v887_v8 = vmul.f32 %v886_v43, %v585_v30 }
 0x1d1   : > { %v918_v33 = vmul.f32 %v917_v32, %v585_v30  ;;  %v949_v22 = vmul.f32 %v948_v16, %v585_v30  ;;  %v980_v47 = vmul.f32 %v979_v45, %v585_v30  ;;  %v1011_v5 = vmul.f32 %v1010_v36, %v585_v30 }
 0x1d2   : > { %v1042_v6 = vmul.f32 %v1041_v37, %v585_v30  ;;  %v2166_v34 = vadd.f32 %v825_v24, %v819_v38  ;;  %v2168_v39 = vadd.f32 %v856_v19, %v850_v44  ;;  %v2170_v27 = vadd.f32 %v887_v8, %v881_v54 }
 0x1d3   : > { %v2172_v49 = vadd.f32 %v918_v33, %v912_v61  ;;  %v2178_v42 = vadd.f32 %v949_v22, %v943_v62  ;;  %v2180_v21 = vadd.f32 %v980_v47, %v974_v63  ;;  %v2182_v53 = vadd.f32 %v1011_v5, %v1005_v2 }
 0x1d4   : > { %v691_v4 = vpop.permute.xlu1 %690  ;;  %v790_v10 = vpop.permute.xlu0 %789  ;;  %v2184_v46 = vadd.f32 %v1042_v6, %v1036_v51  ;;  %v944_v38 = vmul.f32 %v942_v11, %v471_v60  ;;  %v975_v44 = vmul.f32 %v973_v56, %v471_v60  ;;  %v1006_v30 = vmul.f32 %v1004_v14, %v471_v60 }
 0x1d5   : > { %v586_v54 = vmax.f32 %v584_v3, 0.0  ;;  %v1037_v61 = vmul.f32 %v1035_v17, %v471_v60  ;;  %v681_v62 = vadd.f32 %v677_v35, %v2018_v25  ;;  %v694_v63 = vadd.f32 %v689_v1, %v680_v7 }
 0x1d6   : > { %v795_v11 = vadd.f32 %v790_v10, %v2072_v0  ;;  %v929_v7 = vstv %s2164_s11  ;;  %v991_v19 = vstv %s2176_s14  ;;  %v1022_v8 = vstv %s2186_s24 }
 0x1d7   : > { %v826_v56 = vmul.f32 %v824_v29, %v586_v54  ;;  %v857_v14 = vmul.f32 %v855_v31, %v586_v54  ;;  %v888_v51 = vmul.f32 %v886_v43, %v586_v54  ;;  %v919_v3 = vmul.f32 %v917_v32, %v586_v54 }
 0x1d8   : > { %v792_v2 = vpop.permute.xlu1 %791  ;;  %v950_v24 = vmul.f32 %v948_v16, %v586_v54  ;;  %v981_v25 = vmul.f32 %v979_v45, %v586_v54  ;;  %v1012_v17 = vmul.f32 %v1010_v36, %v586_v54  ;;  %v1043_v0 = vmul.f32 %v1041_v37, %v586_v54  ;;  %v804_v60 = vpop.permute.xlu0 %803 }
 0x1d9   : > { %v2222_v35 = vadd.f32 %v826_v56, %v820_v9  ;;  %v2224_v29 = vadd.f32 %v857_v14, %v851_v15  ;;  %v2226_v31 = vadd.f32 %v888_v51, %v882_v23  ;;  %v2228_v43 = vadd.f32 %v919_v3, %v913_v40 }
 0x1da   : > { %v2230_v32 = vadd.f32 %v950_v24, %v944_v38  ;;  %v2232_v16 = vadd.f32 %v981_v25, %v975_v44  ;;  %v2234_v45 = vadd.f32 %v1012_v17, %v1006_v30  ;;  %v2236_v36 = vadd.f32 %v1043_v0, %v1037_v61 }
 0x1db   : > { %v698_v37 = vadd.f32 %v697_v12, %v694_v63  ;;  %v695_v1 = vadd.f32 %v691_v4, %v681_v62  ;;  %v809_v9 = vadd.f32 %v804_v60, %v795_v11  ;;  %v796_v23 = vadd.f32 %v792_v2, %v2099_v26 }
 0x1dc   : > { %v806_v15 = vpop.permute.xlu1 %805  ;;  %v960_v40 = vstv %s2174_s15  ;;  %v842_v22 = vstv %s2196_s22  ;;  %v873_v47 = vstv %s2198_s5  ;;  %v1053_v5 = vstv %s2188_s27  ;;  %s1066_s5 = scalar_lea.sflag [#allocation5], %s1777_s10 }
 0x1dd   : > { %v700_v33 = vmax.f32 %v698_v37, 0.0  ;;  %v699_v6 = vadd.f32 %v697_v12, %v695_v1  ;;  %v904_v26 = vstv %s2204_s29  ;;  %v813_v4 = vadd.f32 %v812_v50, %v809_v9 }
 0x1de   : > { %v810_v10 = vadd.f32 %v806_v15, %v796_v23  ;;  %v935_v25 = vstv %s2238_s0  ;;  %v997_v17 = vstv %s2245_s2  ;;  %v1059_v0 = vstv %s2253_s23 }
 0x1df   : > { %v831_v38 = vmul.f32 %v830_v13, %v700_v33  ;;  %v862_v44 = vmul.f32 %v861_v20, %v700_v33  ;;  %v893_v30 = vmul.f32 %v892_v41, %v700_v33  ;;  %v924_v54 = vmul.f32 %v923_v28, %v700_v33 }
 0x1e0   : > { %v955_v61 = vmul.f32 %v954_v48, %v700_v33  ;;  %v986_v62 = vmul.f32 %v985_v52, %v700_v33  ;;  %v1017_v12 = vmul.f32 %v1016_v18, %v700_v33  ;;  %v1048_v63 = vmul.f32 %v1047_v55, %v700_v33 }
 0x1e1   : > { %v833_v11 = vadd.f32 %v831_v38, %v2166_v34  ;;  %v864_v2 = vadd.f32 %v862_v44, %v2168_v39  ;;  %v895_v56 = vadd.f32 %v893_v30, %v2170_v27  ;;  %v926_v14 = vadd.f32 %v924_v54, %v2172_v49 }
 0x1e2   : > { %v957_v51 = vadd.f32 %v955_v61, %v2178_v42  ;;  %v988_v3 = vadd.f32 %v986_v62, %v2180_v21  ;;  %v1019_v24 = vadd.f32 %v1017_v12, %v2182_v53  ;;  %v1050_v34 = vadd.f32 %v1048_v63, %v2184_v46 }
 0x1e3   : > { %v701_v39 = vmax.f32 %v699_v6, 0.0  ;;  %v966_v27 = vstv %s2243_s1  ;;  %v1028_v49 = vstv %s2251_s3  ;;  %v815_v60 = vmax.f32 %v813_v4, 0.0 }
 0x1e4   : > { %v814_v42 = vadd.f32 %v812_v50, %v810_v10 }
 0x1e5   : > { %v832_v21 = vmul.f32 %v830_v13, %v701_v39  ;;  %v863_v53 = vmul.f32 %v861_v20, %v701_v39  ;;  %v894_v46 = vmul.f32 %v892_v41, %v701_v39  ;;  %v925_v37 = vmul.f32 %v923_v28, %v701_v39 }
 0x1e6   : > { %v956_v1 = vmul.f32 %v954_v48, %v701_v39  ;;  %v987_v9 = vmul.f32 %v985_v52, %v701_v39  ;;  %v1018_v50 = vmul.f32 %v1016_v18, %v701_v39  ;;  %v1049_v13 = vmul.f32 %v1047_v55, %v701_v39 }
 0x1e7   : > { %v834_v20 = vadd.f32 %v832_v21, %v2222_v35  ;;  %v865_v41 = vadd.f32 %v863_v53, %v2224_v29  ;;  %v896_v28 = vadd.f32 %v894_v46, %v2226_v31  ;;  %v927_v15 = vadd.f32 %v925_v37, %v2228_v43 }
 0x1e8   : > { %v958_v48 = vadd.f32 %v956_v1, %v2230_v32  ;;  %v989_v52 = vadd.f32 %v987_v9, %v2232_v16  ;;  %v1020_v23 = vadd.f32 %v1018_v50, %v2234_v45  ;;  %v1051_v18 = vadd.f32 %v1049_v13, %v2236_v36 }
 0x1e9   : > { %v837_v55 = vmul.f32 %v836_v58, %v815_v60  ;;  %v868_v35 = vmul.f32 %v867_v57, %v815_v60  ;;  %v899_v29 = vmul.f32 %v898_v59, %v815_v60  ;;  %v930_v31 = vmul.f32 %v929_v7, %v815_v60 }
 0x1ea   : > { %v961_v43 = vmul.f32 %v960_v40, %v815_v60  ;;  %v992_v32 = vmul.f32 %v991_v19, %v815_v60  ;;  %v1023_v16 = vmul.f32 %v1022_v8, %v815_v60  ;;  %v1054_v45 = vmul.f32 %v1053_v5, %v815_v60 }
 0x1eb   : > { %v839_v36 = vadd.f32 %v837_v55, %v833_v11  ;;  %v870_v33 = vadd.f32 %v868_v35, %v864_v2  ;;  %v901_v6 = vadd.f32 %v899_v29, %v895_v56  ;;  %v932_v4 = vadd.f32 %v930_v31, %v926_v14 }
 0x1ec   : > { %v963_v10 = vadd.f32 %v961_v43, %v957_v51  ;;  %v994_v38 = vadd.f32 %v992_v32, %v988_v3  ;;  %v1025_v44 = vadd.f32 %v1023_v16, %v1019_v24  ;;  %v1056_v30 = vadd.f32 %v1054_v45, %v1050_v34 }
 0x1ed   : > { %v843_v54 = vadd.f32 %v842_v22, %v839_v36  ;;  %v874_v61 = vadd.f32 %v873_v47, %v870_v33  ;;  %v905_v62 = vadd.f32 %v904_v26, %v901_v6  ;;  %v936_v12 = vadd.f32 %v935_v25, %v932_v4 }
 0x1ee   : > { %v967_v63 = vadd.f32 %v966_v27, %v963_v10  ;;  %v998_v11 = vadd.f32 %v997_v17, %v994_v38  ;;  %v1029_v2 = vadd.f32 %v1028_v49, %v1025_v44  ;;  %v1060_v56 = vadd.f32 %v1059_v0, %v1056_v30 }
 0x1ef   : > { %846 = vst.msk [vmem:[%s2351_s19] sm:$0xff] %vm845_vm3, %v843_v54  ;;  %1256 = vst.msk [vmem:[%s2351_s19 + $0x10] sm:$0xff] %vm845_vm3, %v874_v61  ;;  %v816_v14 = vmax.f32 %v814_v42, 0.0 }
 0x1f0   : > { %1263 = vst.msk [vmem:[%s2351_s19 + $0x20] sm:$0xff] %vm845_vm3, %v905_v62  ;;  %1270 = vst.msk [vmem:[%s2351_s19 + $0x30] sm:$0xff] %vm845_vm3, %v936_v12 }
 0x1f1   : > { %1277 = vst.msk [vmem:[%s2351_s19 + $0x40] sm:$0xff] %vm845_vm3, %v967_v63  ;;  %1284 = vst.msk [vmem:[%s2351_s19 + $0x50] sm:$0xff] %vm845_vm3, %v998_v11  ;;  %v838_v51 = vmul.f32 %v836_v58, %v816_v14  ;;  %v869_v3 = vmul.f32 %v867_v57, %v816_v14  ;;  %v900_v24 = vmul.f32 %v898_v59, %v816_v14 }
 0x1f2   : > { %1291 = vst.msk [vmem:[%s2351_s19 + $0x60] sm:$0xff] %vm845_vm3, %v1029_v2  ;;  %1298 = vst.msk [vmem:[%s2351_s19 + $0x70] sm:$0xff] %vm845_vm3, %v1060_v56  ;;  %v931_v34 = vmul.f32 %v929_v7, %v816_v14  ;;  %v962_v39 = vmul.f32 %v960_v40, %v816_v14  ;;  %v993_v60 = vmul.f32 %v991_v19, %v816_v14 }
 0x1f3   : > { %v1024_v42 = vmul.f32 %v1022_v8, %v816_v14  ;;  %v1055_v21 = vmul.f32 %v1053_v5, %v816_v14  ;;  %v840_v58 = vadd.f32 %v838_v51, %v834_v20  ;;  %v871_v57 = vadd.f32 %v869_v3, %v865_v41 }
 0x1f4   : > { %v902_v59 = vadd.f32 %v900_v24, %v896_v28  ;;  %v933_v7 = vadd.f32 %v931_v34, %v927_v15  ;;  %v964_v40 = vadd.f32 %v962_v39, %v958_v48  ;;  %v995_v19 = vadd.f32 %v993_v60, %v989_v52 }
 0x1f5   : > { %v1026_v53 = vadd.f32 %v1024_v42, %v1020_v23  ;;  %v1057_v8 = vadd.f32 %v1055_v21, %v1051_v18  ;;  %v844_v5 = vadd.f32 %v842_v22, %v840_v58  ;;  %v875_v46 = vadd.f32 %v873_v47, %v871_v57 }
 0x1f6   : > { %v906_v37 = vadd.f32 %v904_v26, %v902_v59  ;;  %v937_v1 = vadd.f32 %v935_v25, %v933_v7  ;;  %v968_v22 = vadd.f32 %v966_v27, %v964_v40  ;;  %v999_v47 = vadd.f32 %v997_v17, %v995_v19 }
 0x1f7   : > { %v1030_v9 = vadd.f32 %v1028_v49, %v1026_v53  ;;  %v1061_v26 = vadd.f32 %v1059_v0, %v1057_v8  ;;  %847 = vst.msk [vmem:[%s2351_s19 + $0x8] sm:$0xff] %vm845_vm3, %v844_v5  ;;  %1257 = vst.msk [vmem:[%s2351_s19 + $0x18] sm:$0xff] %vm845_vm3, %v875_v46 }
 0x1f8   : > { %1264 = vst.msk [vmem:[%s2351_s19 + $0x28] sm:$0xff] %vm845_vm3, %v906_v37  ;;  %1271 = vst.msk [vmem:[%s2351_s19 + $0x38] sm:$0xff] %vm845_vm3, %v937_v1 }
 0x1f9   : > { %1278 = vst.msk [vmem:[%s2351_s19 + $0x48] sm:$0xff] %vm845_vm3, %v968_v22  ;;  %1285 = vst.msk [vmem:[%s2351_s19 + $0x58] sm:$0xff] %vm845_vm3, %v999_v47 }
 0x1fa   : > { %1292 = vst.msk [vmem:[%s2351_s19 + $0x68] sm:$0xff] %vm845_vm3, %v1030_v9  ;;  %1299 = vst.msk [vmem:[%s2351_s19 + $0x78] sm:$0xff] %vm845_vm3, %v1061_v26 }
 0x1fb   : > { %1505 = shalt.err (!%p1502_p0)
}
 0x1fc   : > { %s1506_s6 = scalar_lea.hbm %s2398_s16, 2048  ;;  %s1510_s15 = scalar_lea.hbm %s2532_s12, 4096 }
 0x1fd   : > { %p1507_p11 = scmp.ne.s32.totalorder %s2398_s16, %s1506_s6  ;;  %p1511_p5 = scmp.lt.u32.totalorder %s2398_s16, %s2532_s12 }
 0x1fe   : > { %p1512_p4 = scmp.lt.u32.totalorder %s1510_s15, %s1506_s6  ;;  %p1514_p7 = scmp.lt.u32.totalorder %s1506_s6, %s2398_s16 }
 0x1ff   : > { %p1508_p1 = pnand %p1507_p11, %p1728_p6 }
 0x200   : > { %p1513_p8 = por %p1512_p4, %p1511_p5 }
 0x201   : > { %p1509_p2 = pneg %p1508_p1 }
 0x202   : > { %p1515_p12 = por %p1514_p7, %p1513_p8 }
 0x204   : > { %p1516_p9 = pnand %p1515_p12, %p1509_p2 }
 0x206   : > { %1519 = shalt.err (!%p1516_p9)
}
 0x207   : > { %s1584_s27 = smov 128   ;;  %s1585_s29 = smov 8  }
 0x208   : > { %1325 = dma.vmem_to_hbm [thread:$0]  (%p1728_p6), %s2400_s25, 2048, %s2398_s16, %s1066_s5, %s1584_s27, %s1584_s27, %s1585_s29  }
 0x209 PF: > { %s2534_s0 = sld [smem:[#allocation19_spill]]  ;;  %s2535_s1 = sld [smem:[#allocation24_spill]] }
 0x20a   : > { %s2536_s2 = sld [smem:[#allocation22_spill]] }
 0x20f   : > { %s1094_s3 = sand.u32 1, %s2534_s0   ;;  %p2537_p3 = scmp.ne.s32.totalorder %s2535_s1, 0 }
 0x210   : > { %p2538_p13 = scmp.ge.s32.totalorder %s2536_s2, 2  ;;  %s1095_s23 = scalar_lea.sflag [#allocation5], %s1094_s3 }
 0x212   : > { %p1345_p10 = pnand %p2538_p13, %p2537_p3 }
 0x214   : > { %1553 = dma.done.wait (!%p1345_p10), %s1095_s23, 2048  }
 0x215   : > { %1555 = vsyncadd (!%p1345_p10), %s1095_s23, 4294965248  ;;  %s2539_s21 = sld [smem:[#allocation25_spill]]  ;;  %s2540_s18 = sld [smem:[#allocation20_spill]] }
 0x216   : > { %s2541_s19 = sld [smem:[#allocation21_spill]]  ;;  %s2542_s20 = sld [smem:[#allocation26_spill]] }
 0x21b   : > { %p21_p0 = scmp.ge.s32.totalorder %s2539_s21, 4  }
 0x21d   :  { %23 = sbr.rel (!%p21_p0) target bundleno = 15 (0xf), region = 112 }
 0x224   :  { %1100 = vsyncpa [#allocation4], 1 }
 0x225   :  { %1102 = vsyncpa [#allocation4 + $0x1], 1 }
 0x226   :  { %1103 = vsyncpa [#allocation5], 1 }
 0x227   :  { %1105 = vsyncpa [#allocation5 + $0x1], 1 }
 0x228   :  { %1106 = vsyncpa [#allocation6], 1 }
 0x229   :  { %1108 = vsyncpa [#allocation6 + $0x1], 1 }
 0x22a   :  { %1109 = vsyncpa [#allocation9], 1 }
 0x22b   :  { %1110 = vsyncpa [#allocation12], 1 }

</bundles_post_ra>
